<compile_context>
chip_gen: v7x
topology: tpu7x:2x2x1
jax: 0.10.0
libtpu: 0.0.40
codegen_flags: <defaults>
</compile_context>

<pallas_src>
import jax
import jax.numpy as jnp
from jax.experimental import pallas as pl
from jax.experimental.pallas import tpu as pltpu

LANE = 128      # vreg lane width; head output padded to this for a dense store


def _round_up(x, m):
    return (x + m - 1) // m * m


def _pick_batch_block(batch):
    """Batch rows per grid step: fill the MXU M dimension, and give v7x's two
    TensorCores separate blocks whenever the padded batch splits evenly."""
    b8 = _round_up(batch, 8)
    if b8 >= 512:
        return 256                       # many full-height blocks (v6e/v7x MXU rows)
    if b8 >= 16 and (b8 // 2) % 8 == 0:
        return b8 // 2                   # exactly two blocks -> both v7x TCs busy
    return b8                            # tiny batch: one block (grid of 1)


# ----------------------------------------------------------------------------------
# Fused Pallas kernel: bidirectional LSTM recurrence + classifier head epilogue.
# ----------------------------------------------------------------------------------
def bilstm_head_kernel(x_ref,     # (B_blk, T, 2*D_in)  [x(t) | x(T-1-t)]          (bf16)
                       cls_ref,   # (B_blk, enc_dim)    encoder CLS features       (bf16)
                       wih_ref,   # (2*D_in, 8H)  block-structured, gate-interleaved (bf16)
                       whh_ref,   # (2H, 8H)      block-diag, gate-interleaved      (bf16)
                       bias_ref,  # (1, 8H)       b_ih+b_hh, gate-interleaved       (f32)
                       hwc_ref,   # (enc_dim, LANE)  head weight^T (cls part)       (bf16)
                       hwl_ref,   # (2H, LANE)       head weight^T (lstm part)      (bf16)
                       hb_ref,    # (1, LANE)        head bias, lane-padded         (f32)
                       out_ref):  # (B_blk, LANE)    lane-dense padded logits       (f32)
    B, T, D2 = x_ref.shape
    H8 = whh_ref.shape[1]          # 8H (4 gates x [fwd|bwd])
    H2 = H8 // 4                   # 2H = one gate block = [fwd H | bwd H]

    # ---- head cls-part first: independent MXU work, hides under the serial scan ----
    cls_part = (jnp.dot(cls_ref[...], hwc_ref[...],
                        preferred_element_type=jnp.float32) + hb_ref[...])   # (B, LANE)

    # ---- input projection: ONE MXU matmul for all timesteps & both directions,
    #      bias folded in.  x row t carries [x(t) | x(T-1-t)] and wih is block-
    #      structured, so proj[:, t, fwd-cols] uses x(t) and bwd-cols use x(T-1-t). ----
    x2 = x_ref[...].reshape(B * T, D2)                                       # bf16
    proj = (jnp.dot(x2, wih_ref[...], preferred_element_type=jnp.float32)
            + bias_ref[...]).reshape(B, T, H8)                               # f32

    whh = whh_ref[...]                                                       # (2H, 8H)

    hc = jnp.zeros((B, H2), jnp.float32)   # [h_fwd | h_bwd] combined hidden state
    c = jnp.zeros((B, H2), jnp.float32)    # [c_fwd | c_bwd] combined cell state

    # Fully unrolled (T static & small); only hc/c are serial.  Interleaved gate
    # packing keeps every slice a contiguous 2H-lane block and removes all
    # per-timestep concatenates from the critical path.
    # TODO(synk): at large batch blocks (>=128 rows) chunk this gate math over
    # sublane row groups if vreg spills show up on the serial path.
    for t in range(T):
        g = jnp.dot(hc.astype(jnp.bfloat16), whh,
                    preferred_element_type=jnp.float32) + proj[:, t, :]      # (B, 8H)
        i_g = jax.nn.sigmoid(g[:, 0 * H2:1 * H2])
        f_g = jax.nn.sigmoid(g[:, 1 * H2:2 * H2])
        g_g = jnp.tanh(g[:, 2 * H2:3 * H2])
        o_g = jax.nn.sigmoid(g[:, 3 * H2:4 * H2])
        c = f_g * c + i_g * g_g
        hc = o_g * jnp.tanh(c)             # directly [h_fwd | h_bwd]

    # ---- fused head epilogue: logits = cls@Wc + [h_f|h_b]@Wl + b  (no concat) ----
    logits = cls_part + jnp.dot(hc.astype(jnp.bfloat16), hwl_ref[...],
                                preferred_element_type=jnp.float32)
    out_ref[...] = logits.astype(out_ref.dtype)    # single unmasked (B, 128) store


def fused_bilstm_head(cls_out, x_btd, wih_f, whh_f, b_f, wih_b, whh_b, b_b,
                      head_w, head_b):
    B, T, D_in = x_btd.shape
    H = whh_f.shape[1]
    H2, H8 = 2 * H, 8 * H
    enc_dim = cls_out.shape[1]
    num_labels = head_w.shape[0]

    b_block = _pick_batch_block(B)
    B_pad = _round_up(B, b_block)
    grid = (B_pad // b_block,)

    # ---- per-example streamed operands: bf16, batch-major (contiguous DMA per
    #      block), batch-padded; last dim = [x(t) | x(T-1-t)] ----
    x_aug = jnp.concatenate([x_btd, x_btd[:, ::-1, :]], axis=-1).astype(jnp.bfloat16)
    x_p = jnp.zeros((B_pad, T, 2 * D_in), jnp.bfloat16).at[:B].set(x_aug)
    cls_p = jnp.zeros((B_pad, enc_dim), jnp.bfloat16).at[:B].set(
        cls_out.astype(jnp.bfloat16))

    # ---- weights: pre-transposed, direction-fused, gate-INTERLEAVED
    #      column layout [i_f i_b | f_f f_b | g_f g_b | o_f o_b] (each sub-block H) ----
    wih_aug = jnp.zeros((2 * D_in, H8), jnp.float32)
    whh_big = jnp.zeros((H2, H8), jnp.float32)
    bias = jnp.zeros((1, H8), jnp.float32)
    for gt in range(4):                      # PyTorch gate order: i, f, g, o
        gate = slice(gt * H, (gt + 1) * H)
        fcol = slice(gt * H2, gt * H2 + H)
        bcol = slice(gt * H2 + H, (gt + 1) * H2)
        wih_aug = wih_aug.at[:D_in, fcol].set(wih_f.T[:, gate])
        wih_aug = wih_aug.at[D_in:, bcol].set(wih_b.T[:, gate])
        whh_big = whh_big.at[:H, fcol].set(whh_f.T[:, gate])
        whh_big = whh_big.at[H:, bcol].set(whh_b.T[:, gate])
        bias = bias.at[:, fcol].set(b_f[:, gate])
        bias = bias.at[:, bcol].set(b_b[:, gate])
    wih_aug = wih_aug.astype(jnp.bfloat16)
    whh_big = whh_big.astype(jnp.bfloat16)

    # ---- head split (cls / lstm parts), transposed + lane-padded to 128 ----
    hw_cls = (jnp.zeros((enc_dim, LANE), jnp.float32)
              .at[:, :num_labels].set(head_w.T[:enc_dim])).astype(jnp.bfloat16)
    hw_lstm = (jnp.zeros((H2, LANE), jnp.float32)
               .at[:, :num_labels].set(head_w.T[enc_dim:])).astype(jnp.bfloat16)
    hb = jnp.zeros((1, LANE), jnp.float32).at[:, :num_labels].set(head_b)

    out_pad = pl.pallas_call(
        bilstm_head_kernel,
        out_shape=jax.ShapeDtypeStruct((B_pad, LANE), jnp.float32),
        grid_spec=pltpu.PrefetchScalarGridSpec(
            num_scalar_prefetch=0,
            grid=grid,
            in_specs=[
                pl.BlockSpec((b_block, T, 2 * D_in), lambda b: (b, 0, 0)),
                pl.BlockSpec((b_block, enc_dim), lambda b: (b, 0)),
                pl.BlockSpec((2 * D_in, H8), lambda b: (0, 0)),
                pl.BlockSpec((H2, H8), lambda b: (0, 0)),
                pl.BlockSpec((1, H8), lambda b: (0, 0)),
                pl.BlockSpec((enc_dim, LANE), lambda b: (0, 0)),
                pl.BlockSpec((H2, LANE), lambda b: (0, 0)),
                pl.BlockSpec((1, LANE), lambda b: (0, 0)),
            ],
            out_specs=pl.BlockSpec((b_block, LANE), lambda b: (b, 0)),
        ),
        compiler_params=pltpu.CompilerParams(
            # Shards batch blocks across v7x's two TensorCores when grid >= 2
            # (real batches); the toy batch below runs as a single block.
            dimension_semantics=("parallel",),
        ),
    )(x_p, cls_p, wih_aug, whh_big, bias, hw_cls, hw_lstm, hb)

    return out_pad[:B, :num_labels]


# ----------------------------------------------------------------------------------
# Parameter init + full forward (glue in plain JAX, hot path in the fused kernel)
# ----------------------------------------------------------------------------------
def init_params(key, *, bert_vocab, encoder_dim, vocab_sizes, embedding_dim,
                lstm_hidden_dim, num_labels):
    ks = jax.random.split(key, 12)
    D_in = embedding_dim * len(vocab_sizes)
    H = lstm_hidden_dim

    def unif(k, shape, scale=0.1):
        return jax.random.uniform(k, shape, jnp.float32, -scale, scale)

    params = {
        "enc_tok_emb": unif(ks[0], (bert_vocab, encoder_dim)),
        "dep_embs": [unif(ks[1 + i], (vocab_sizes[i], embedding_dim))
                     for i in range(len(vocab_sizes))],
        # LSTM (PyTorch layout: weight_ih (4H, D_in), weight_hh (4H, H));
        # biases b_ih + b_hh are pre-summed into a single (1, 4H) vector per direction.
        "wih_f": unif(ks[4], (4 * H, D_in)),
        "whh_f": unif(ks[5], (4 * H, H)),
        "b_f": unif(ks[6], (1, 4 * H)),
        "wih_b": unif(ks[7], (4 * H, D_in)),
        "whh_b": unif(ks[8], (4 * H, H)),
        "b_b": unif(ks[9], (1, 4 * H)),
        # task head: Linear(encoder_dim + 2H, num_labels)
        "head_w": unif(ks[10], (num_labels, encoder_dim + 2 * H)),
        "head_b": unif(ks[11], (1, num_labels)),
    }
    return params


def single_task_dep_forward(params, input_ids, attention_mask, dep_tags):
    # --- encoder ---
    # TODO(synk): pretrained AutoModel transformer encoder has no in-script equivalent;
    # replaced by a deterministic token-embedding stub producing last_hidden_state.
    # attention_mask is accepted but unused (encoder stub; LSTM has no length masking).
    del attention_mask
    last_hidden = jnp.take(params["enc_tok_emb"], input_ids, axis=0)   # (B, S, enc_dim)
    cls_out = last_hidden[:, 0]                                        # (B, enc_dim)

    # --- LSTM_enc: per-vocab embedding lookups + concat (gather kept as JAX glue) ---
    embeds = [jnp.take(emb, tags, axis=0)
              for emb, tags in zip(params["dep_embs"], dep_tags)]      # each (B, T, E)
    concat_embeds = jnp.concatenate(embeds, axis=2)                    # (B, T, D_in)

    # --- fused bidirectional LSTM + task head (Dropout in eval mode == identity) ---
    logits = fused_bilstm_head(cls_out, concat_embeds,
                               params["wih_f"], params["whh_f"], params["b_f"],
                               params["wih_b"], params["whh_b"], params["b_b"],
                               params["head_w"], params["head_b"])     # (B, num_labels)
    return logits


if __name__ == "__main__":
    # Small configuration consistent with the module's __init__.
    B, S, T = 2, 8, 8
    embedding_dim = 8
    lstm_hidden_dim = 32       # multiple of 32 so gate blocks stay lane-aligned
    encoder_dim = 32
    num_labels = 2
    vocab_sizes = [11, 7]      # Vocabulary.get_vocab_sizes() -> two dep-tag vocabs
    bert_vocab = 64

    key = jax.random.PRNGKey(0)
    k_params, k_ids, k_dep0, k_dep1 = jax.random.split(key, 4)

    params = init_params(k_params,
                         bert_vocab=bert_vocab, encoder_dim=encoder_dim,
                         vocab_sizes=vocab_sizes, embedding_dim=embedding_dim,
                         lstm_hidden_dim=lstm_hidden_dim, num_labels=num_labels)

    input_ids = jax.random.randint(k_ids, (B, S), 0, bert_vocab, dtype=jnp.int32)
    attention_mask = jnp.ones((B, S), dtype=jnp.int32)
    dep_tags = [jax.random.randint(k_dep0, (B, T), 0, vocab_sizes[0], dtype=jnp.int32),
                jax.random.randint(k_dep1, (B, T), 0, vocab_sizes[1], dtype=jnp.int32)]

    fwd = jax.jit(single_task_dep_forward)
    logits = fwd(params, input_ids, attention_mask, dep_tags)
    jax.block_until_ready(logits)
    assert logits.shape == (B, num_labels)
    print("KERNEL_OK")
</pallas_src>

<mosaic_0001>
module attributes {stable_mosaic.version = 11 : i64} {
  func.func @bilstm_head_kernel(%arg0: i32, %arg1: memref<8x8x32xbf16, #tpu.memory_space<vmem>>, %arg2: memref<8x32xbf16, #tpu.memory_space<vmem>>, %arg3: memref<32x256xbf16, #tpu.memory_space<vmem>>, %arg4: memref<64x256xbf16, #tpu.memory_space<vmem>>, %arg5: memref<1x256xf32, #tpu.memory_space<vmem>>, %arg6: memref<32x128xbf16, #tpu.memory_space<vmem>>, %arg7: memref<64x128xbf16, #tpu.memory_space<vmem>>, %arg8: memref<1x128xf32, #tpu.memory_space<vmem>>, %arg9: memref<8x128xf32, #tpu.memory_space<vmem>>) attributes {dimension_semantics = [#tpu.dimension_semantics<parallel>], iteration_bounds = array<i64: 1>, scalar_prefetch = 0 : i64, scratch_operands = 0 : i64, tpu.core_type = #tpu.core_type<tc>, window_params = [{transform_indices = @transform_0, window_bounds = array<i64: 8, 8, 32>}, {transform_indices = @transform_1, window_bounds = array<i64: 8, 32>}, {pipeline_mode = #tpu.pipeline_mode<synchronous>, transform_indices = @transform_2, window_bounds = array<i64: 32, 256>}, {pipeline_mode = #tpu.pipeline_mode<synchronous>, transform_indices = @transform_3, window_bounds = array<i64: 64, 256>}, {pipeline_mode = #tpu.pipeline_mode<synchronous>, transform_indices = @transform_4, window_bounds = array<i64: 1, 256>}, {pipeline_mode = #tpu.pipeline_mode<synchronous>, transform_indices = @transform_5, window_bounds = array<i64: 32, 128>}, {pipeline_mode = #tpu.pipeline_mode<synchronous>, transform_indices = @transform_6, window_bounds = array<i64: 64, 128>}, {pipeline_mode = #tpu.pipeline_mode<synchronous>, transform_indices = @transform_7, window_bounds = array<i64: 1, 128>}, {transform_indices = @transform_8, window_bounds = array<i64: 8, 128>}]} {
    %c0 = arith.constant 0 : index
    %c0_0 = arith.constant 0 : index
    %0 = vector.load %arg2[%c0, %c0_0] : memref<8x32xbf16, #tpu.memory_space<vmem>>, vector<8x32xbf16>
    %c0_1 = arith.constant 0 : index
    %c0_2 = arith.constant 0 : index
    %1 = vector.load %arg6[%c0_1, %c0_2] : memref<32x128xbf16, #tpu.memory_space<vmem>>, vector<32x128xbf16>
    %cst = arith.constant dense<0.000000e+00> : vector<8x128xf32>
    %2 = tpu.matmul %0, %1, %cst {dimension_numbers = #tpu.dot_dimension_numbers<[1], [0], [0], [1], [0, 0, 1, 1], [], []>} : vector<8x32xbf16>, vector<32x128xbf16>, vector<8x128xf32> -> vector<8x128xf32>
    %c0_3 = arith.constant 0 : index
    %c0_4 = arith.constant 0 : index
    %3 = vector.load %arg8[%c0_3, %c0_4] : memref<1x128xf32, #tpu.memory_space<vmem>>, vector<1x128xf32>
    %4 = vector.broadcast %3 : vector<1x128xf32> to vector<8x128xf32>
    %5 = arith.addf %2, %4 : vector<8x128xf32>
    %c0_5 = arith.constant 0 : index
    %c0_6 = arith.constant 0 : index
    %c0_7 = arith.constant 0 : index
    %6 = vector.load %arg1[%c0_5, %c0_6, %c0_7] : memref<8x8x32xbf16, #tpu.memory_space<vmem>>, vector<8x8x32xbf16>
    %7 = vector.shape_cast %6 : vector<8x8x32xbf16> to vector<64x32xbf16>
    %c0_8 = arith.constant 0 : index
    %c0_9 = arith.constant 0 : index
    %8 = vector.load %arg3[%c0_8, %c0_9] : memref<32x256xbf16, #tpu.memory_space<vmem>>, vector<32x256xbf16>
    %cst_10 = arith.constant dense<0.000000e+00> : vector<64x256xf32>
    %9 = tpu.matmul %7, %8, %cst_10 {dimension_numbers = #tpu.dot_dimension_numbers<[1], [0], [0], [1], [0, 0, 1, 1], [], []>} : vector<64x32xbf16>, vector<32x256xbf16>, vector<64x256xf32> -> vector<64x256xf32>
    %c0_11 = arith.constant 0 : index
    %c0_12 = arith.constant 0 : index
    %10 = vector.load %arg5[%c0_11, %c0_12] : memref<1x256xf32, #tpu.memory_space<vmem>>, vector<1x256xf32>
    %11 = vector.broadcast %10 : vector<1x256xf32> to vector<64x256xf32>
    %12 = arith.addf %9, %11 : vector<64x256xf32>
    %13 = vector.shape_cast %12 : vector<64x256xf32> to vector<8x8x256xf32>
    %c0_13 = arith.constant 0 : index
    %c0_14 = arith.constant 0 : index
    %14 = vector.load %arg4[%c0_13, %c0_14] : memref<64x256xbf16, #tpu.memory_space<vmem>>, vector<64x256xbf16>
    %cst_15 = arith.constant 0.000000e+00 : f32
    %15 = vector.broadcast %cst_15 : f32 to vector<8x64xf32>
    %cst_16 = arith.constant 0.000000e+00 : f32
    %16 = vector.broadcast %cst_16 : f32 to vector<8x64xf32>
    %17 = arith.truncf %15 : vector<8x64xf32> to vector<8x64xbf16>
    %cst_17 = arith.constant dense<0.000000e+00> : vector<8x256xf32>
    %18 = tpu.matmul %17, %14, %cst_17 {dimension_numbers = #tpu.dot_dimension_numbers<[1], [0], [0], [1], [0, 0, 1, 1], [], []>} : vector<8x64xbf16>, vector<64x256xbf16>, vector<8x256xf32> -> vector<8x256xf32>
    %19 = vector.extract_strided_slice %13 {offsets = [0, 0, 0], sizes = [8, 1, 256], strides = [1, 1, 1]} : vector<8x8x256xf32> to vector<8x1x256xf32>
    %20 = vector.shape_cast %19 : vector<8x1x256xf32> to vector<8x256xf32>
    %21 = arith.addf %18, %20 : vector<8x256xf32>
    %22 = vector.extract_strided_slice %21 {offsets = [0, 0], sizes = [8, 64], strides = [1, 1]} : vector<8x256xf32> to vector<8x64xf32>
    %23 = arith.negf %22 : vector<8x64xf32>
    %24 = math.exp %23 : vector<8x64xf32>
    %cst_18 = arith.constant 1.000000e+00 : f32
    %25 = vector.broadcast %cst_18 : f32 to vector<8x64xf32>
    %26 = arith.addf %25, %24 : vector<8x64xf32>
    %27 = arith.divf %25, %26 : vector<8x64xf32>
    %28 = vector.extract_strided_slice %21 {offsets = [0, 64], sizes = [8, 64], strides = [1, 1]} : vector<8x256xf32> to vector<8x64xf32>
    %29 = arith.negf %28 : vector<8x64xf32>
    %30 = math.exp %29 : vector<8x64xf32>
    %cst_19 = arith.constant 1.000000e+00 : f32
    %31 = vector.broadcast %cst_19 : f32 to vector<8x64xf32>
    %32 = arith.addf %31, %30 : vector<8x64xf32>
    %33 = arith.divf %31, %32 : vector<8x64xf32>
    %34 = vector.extract_strided_slice %21 {offsets = [0, 128], sizes = [8, 64], strides = [1, 1]} : vector<8x256xf32> to vector<8x64xf32>
    %35 = math.tanh %34 : vector<8x64xf32>
    %36 = vector.extract_strided_slice %21 {offsets = [0, 192], sizes = [8, 64], strides = [1, 1]} : vector<8x256xf32> to vector<8x64xf32>
    %37 = arith.negf %36 : vector<8x64xf32>
    %38 = math.exp %37 : vector<8x64xf32>
    %cst_20 = arith.constant 1.000000e+00 : f32
    %39 = vector.broadcast %cst_20 : f32 to vector<8x64xf32>
    %40 = arith.addf %39, %38 : vector<8x64xf32>
    %41 = arith.divf %39, %40 : vector<8x64xf32>
    %42 = arith.mulf %33, %16 : vector<8x64xf32>
    %43 = arith.mulf %27, %35 : vector<8x64xf32>
    %44 = arith.addf %42, %43 : vector<8x64xf32>
    %45 = math.tanh %44 : vector<8x64xf32>
    %46 = arith.mulf %41, %45 : vector<8x64xf32>
    %47 = arith.truncf %46 : vector<8x64xf32> to vector<8x64xbf16>
    %cst_21 = arith.constant dense<0.000000e+00> : vector<8x256xf32>
    %48 = tpu.matmul %47, %14, %cst_21 {dimension_numbers = #tpu.dot_dimension_numbers<[1], [0], [0], [1], [0, 0, 1, 1], [], []>} : vector<8x64xbf16>, vector<64x256xbf16>, vector<8x256xf32> -> vector<8x256xf32>
    %49 = vector.extract_strided_slice %13 {offsets = [0, 1, 0], sizes = [8, 1, 256], strides = [1, 1, 1]} : vector<8x8x256xf32> to vector<8x1x256xf32>
    %50 = vector.shape_cast %49 : vector<8x1x256xf32> to vector<8x256xf32>
    %51 = arith.addf %48, %50 : vector<8x256xf32>
    %52 = vector.extract_strided_slice %51 {offsets = [0, 0], sizes = [8, 64], strides = [1, 1]} : vector<8x256xf32> to vector<8x64xf32>
    %53 = arith.negf %52 : vector<8x64xf32>
    %54 = math.exp %53 : vector<8x64xf32>
    %cst_22 = arith.constant 1.000000e+00 : f32
    %55 = vector.broadcast %cst_22 : f32 to vector<8x64xf32>
    %56 = arith.addf %55, %54 : vector<8x64xf32>
    %57 = arith.divf %55, %56 : vector<8x64xf32>
    %58 = vector.extract_strided_slice %51 {offsets = [0, 64], sizes = [8, 64], strides = [1, 1]} : vector<8x256xf32> to vector<8x64xf32>
    %59 = arith.negf %58 : vector<8x64xf32>
    %60 = math.exp %59 : vector<8x64xf32>
    %cst_23 = arith.constant 1.000000e+00 : f32
    %61 = vector.broadcast %cst_23 : f32 to vector<8x64xf32>
    %62 = arith.addf %61, %60 : vector<8x64xf32>
    %63 = arith.divf %61, %62 : vector<8x64xf32>
    %64 = vector.extract_strided_slice %51 {offsets = [0, 128], sizes = [8, 64], strides = [1, 1]} : vector<8x256xf32> to vector<8x64xf32>
    %65 = math.tanh %64 : vector<8x64xf32>
    %66 = vector.extract_strided_slice %51 {offsets = [0, 192], sizes = [8, 64], strides = [1, 1]} : vector<8x256xf32> to vector<8x64xf32>
    %67 = arith.negf %66 : vector<8x64xf32>
    %68 = math.exp %67 : vector<8x64xf32>
    %cst_24 = arith.constant 1.000000e+00 : f32
    %69 = vector.broadcast %cst_24 : f32 to vector<8x64xf32>
    %70 = arith.addf %69, %68 : vector<8x64xf32>
    %71 = arith.divf %69, %70 : vector<8x64xf32>
    %72 = arith.mulf %63, %44 : vector<8x64xf32>
    %73 = arith.mulf %57, %65 : vector<8x64xf32>
    %74 = arith.addf %72, %73 : vector<8x64xf32>
    %75 = math.tanh %74 : vector<8x64xf32>
    %76 = arith.mulf %71, %75 : vector<8x64xf32>
    %77 = arith.truncf %76 : vector<8x64xf32> to vector<8x64xbf16>
    %cst_25 = arith.constant dense<0.000000e+00> : vector<8x256xf32>
    %78 = tpu.matmul %77, %14, %cst_25 {dimension_numbers = #tpu.dot_dimension_numbers<[1], [0], [0], [1], [0, 0, 1, 1], [], []>} : vector<8x64xbf16>, vector<64x256xbf16>, vector<8x256xf32> -> vector<8x256xf32>
    %79 = vector.extract_strided_slice %13 {offsets = [0, 2, 0], sizes = [8, 1, 256], strides = [1, 1, 1]} : vector<8x8x256xf32> to vector<8x1x256xf32>
    %80 = vector.shape_cast %79 : vector<8x1x256xf32> to vector<8x256xf32>
    %81 = arith.addf %78, %80 : vector<8x256xf32>
    %82 = vector.extract_strided_slice %81 {offsets = [0, 0], sizes = [8, 64], strides = [1, 1]} : vector<8x256xf32> to vector<8x64xf32>
    %83 = arith.negf %82 : vector<8x64xf32>
    %84 = math.exp %83 : vector<8x64xf32>
    %cst_26 = arith.constant 1.000000e+00 : f32
    %85 = vector.broadcast %cst_26 : f32 to vector<8x64xf32>
    %86 = arith.addf %85, %84 : vector<8x64xf32>
    %87 = arith.divf %85, %86 : vector<8x64xf32>
    %88 = vector.extract_strided_slice %81 {offsets = [0, 64], sizes = [8, 64], strides = [1, 1]} : vector<8x256xf32> to vector<8x64xf32>
    %89 = arith.negf %88 : vector<8x64xf32>
    %90 = math.exp %89 : vector<8x64xf32>
    %cst_27 = arith.constant 1.000000e+00 : f32
    %91 = vector.broadcast %cst_27 : f32 to vector<8x64xf32>
    %92 = arith.addf %91, %90 : vector<8x64xf32>
    %93 = arith.divf %91, %92 : vector<8x64xf32>
    %94 = vector.extract_strided_slice %81 {offsets = [0, 128], sizes = [8, 64], strides = [1, 1]} : vector<8x256xf32> to vector<8x64xf32>
    %95 = math.tanh %94 : vector<8x64xf32>
    %96 = vector.extract_strided_slice %81 {offsets = [0, 192], sizes = [8, 64], strides = [1, 1]} : vector<8x256xf32> to vector<8x64xf32>
    %97 = arith.negf %96 : vector<8x64xf32>
    %98 = math.exp %97 : vector<8x64xf32>
    %cst_28 = arith.constant 1.000000e+00 : f32
    %99 = vector.broadcast %cst_28 : f32 to vector<8x64xf32>
    %100 = arith.addf %99, %98 : vector<8x64xf32>
    %101 = arith.divf %99, %100 : vector<8x64xf32>
    %102 = arith.mulf %93, %74 : vector<8x64xf32>
    %103 = arith.mulf %87, %95 : vector<8x64xf32>
    %104 = arith.addf %102, %103 : vector<8x64xf32>
    %105 = math.tanh %104 : vector<8x64xf32>
    %106 = arith.mulf %101, %105 : vector<8x64xf32>
    %107 = arith.truncf %106 : vector<8x64xf32> to vector<8x64xbf16>
    %cst_29 = arith.constant dense<0.000000e+00> : vector<8x256xf32>
    %108 = tpu.matmul %107, %14, %cst_29 {dimension_numbers = #tpu.dot_dimension_numbers<[1], [0], [0], [1], [0, 0, 1, 1], [], []>} : vector<8x64xbf16>, vector<64x256xbf16>, vector<8x256xf32> -> vector<8x256xf32>
    %109 = vector.extract_strided_slice %13 {offsets = [0, 3, 0], sizes = [8, 1, 256], strides = [1, 1, 1]} : vector<8x8x256xf32> to vector<8x1x256xf32>
    %110 = vector.shape_cast %109 : vector<8x1x256xf32> to vector<8x256xf32>
    %111 = arith.addf %108, %110 : vector<8x256xf32>
    %112 = vector.extract_strided_slice %111 {offsets = [0, 0], sizes = [8, 64], strides = [1, 1]} : vector<8x256xf32> to vector<8x64xf32>
    %113 = arith.negf %112 : vector<8x64xf32>
    %114 = math.exp %113 : vector<8x64xf32>
    %cst_30 = arith.constant 1.000000e+00 : f32
    %115 = vector.broadcast %cst_30 : f32 to vector<8x64xf32>
    %116 = arith.addf %115, %114 : vector<8x64xf32>
    %117 = arith.divf %115, %116 : vector<8x64xf32>
    %118 = vector.extract_strided_slice %111 {offsets = [0, 64], sizes = [8, 64], strides = [1, 1]} : vector<8x256xf32> to vector<8x64xf32>
    %119 = arith.negf %118 : vector<8x64xf32>
    %120 = math.exp %119 : vector<8x64xf32>
    %cst_31 = arith.constant 1.000000e+00 : f32
    %121 = vector.broadcast %cst_31 : f32 to vector<8x64xf32>
    %122 = arith.addf %121, %120 : vector<8x64xf32>
    %123 = arith.divf %121, %122 : vector<8x64xf32>
    %124 = vector.extract_strided_slice %111 {offsets = [0, 128], sizes = [8, 64], strides = [1, 1]} : vector<8x256xf32> to vector<8x64xf32>
    %125 = math.tanh %124 : vector<8x64xf32>
    %126 = vector.extract_strided_slice %111 {offsets = [0, 192], sizes = [8, 64], strides = [1, 1]} : vector<8x256xf32> to vector<8x64xf32>
    %127 = arith.negf %126 : vector<8x64xf32>
    %128 = math.exp %127 : vector<8x64xf32>
    %cst_32 = arith.constant 1.000000e+00 : f32
    %129 = vector.broadcast %cst_32 : f32 to vector<8x64xf32>
    %130 = arith.addf %129, %128 : vector<8x64xf32>
    %131 = arith.divf %129, %130 : vector<8x64xf32>
    %132 = arith.mulf %123, %104 : vector<8x64xf32>
    %133 = arith.mulf %117, %125 : vector<8x64xf32>
    %134 = arith.addf %132, %133 : vector<8x64xf32>
    %135 = math.tanh %134 : vector<8x64xf32>
    %136 = arith.mulf %131, %135 : vector<8x64xf32>
    %137 = arith.truncf %136 : vector<8x64xf32> to vector<8x64xbf16>
    %cst_33 = arith.constant dense<0.000000e+00> : vector<8x256xf32>
    %138 = tpu.matmul %137, %14, %cst_33 {dimension_numbers = #tpu.dot_dimension_numbers<[1], [0], [0], [1], [0, 0, 1, 1], [], []>} : vector<8x64xbf16>, vector<64x256xbf16>, vector<8x256xf32> -> vector<8x256xf32>
    %139 = vector.extract_strided_slice %13 {offsets = [0, 4, 0], sizes = [8, 1, 256], strides = [1, 1, 1]} : vector<8x8x256xf32> to vector<8x1x256xf32>
    %140 = vector.shape_cast %139 : vector<8x1x256xf32> to vector<8x256xf32>
    %141 = arith.addf %138, %140 : vector<8x256xf32>
    %142 = vector.extract_strided_slice %141 {offsets = [0, 0], sizes = [8, 64], strides = [1, 1]} : vector<8x256xf32> to vector<8x64xf32>
    %143 = arith.negf %142 : vector<8x64xf32>
    %144 = math.exp %143 : vector<8x64xf32>
    %cst_34 = arith.constant 1.000000e+00 : f32
    %145 = vector.broadcast %cst_34 : f32 to vector<8x64xf32>
    %146 = arith.addf %145, %144 : vector<8x64xf32>
    %147 = arith.divf %145, %146 : vector<8x64xf32>
    %148 = vector.extract_strided_slice %141 {offsets = [0, 64], sizes = [8, 64], strides = [1, 1]} : vector<8x256xf32> to vector<8x64xf32>
    %149 = arith.negf %148 : vector<8x64xf32>
    %150 = math.exp %149 : vector<8x64xf32>
    %cst_35 = arith.constant 1.000000e+00 : f32
    %151 = vector.broadcast %cst_35 : f32 to vector<8x64xf32>
    %152 = arith.addf %151, %150 : vector<8x64xf32>
    %153 = arith.divf %151, %152 : vector<8x64xf32>
    %154 = vector.extract_strided_slice %141 {offsets = [0, 128], sizes = [8, 64], strides = [1, 1]} : vector<8x256xf32> to vector<8x64xf32>
    %155 = math.tanh %154 : vector<8x64xf32>
    %156 = vector.extract_strided_slice %141 {offsets = [0, 192], sizes = [8, 64], strides = [1, 1]} : vector<8x256xf32> to vector<8x64xf32>
    %157 = arith.negf %156 : vector<8x64xf32>
    %158 = math.exp %157 : vector<8x64xf32>
    %cst_36 = arith.constant 1.000000e+00 : f32
    %159 = vector.broadcast %cst_36 : f32 to vector<8x64xf32>
    %160 = arith.addf %159, %158 : vector<8x64xf32>
    %161 = arith.divf %159, %160 : vector<8x64xf32>
    %162 = arith.mulf %153, %134 : vector<8x64xf32>
    %163 = arith.mulf %147, %155 : vector<8x64xf32>
    %164 = arith.addf %162, %163 : vector<8x64xf32>
    %165 = math.tanh %164 : vector<8x64xf32>
    %166 = arith.mulf %161, %165 : vector<8x64xf32>
    %167 = arith.truncf %166 : vector<8x64xf32> to vector<8x64xbf16>
    %cst_37 = arith.constant dense<0.000000e+00> : vector<8x256xf32>
    %168 = tpu.matmul %167, %14, %cst_37 {dimension_numbers = #tpu.dot_dimension_numbers<[1], [0], [0], [1], [0, 0, 1, 1], [], []>} : vector<8x64xbf16>, vector<64x256xbf16>, vector<8x256xf32> -> vector<8x256xf32>
    %169 = vector.extract_strided_slice %13 {offsets = [0, 5, 0], sizes = [8, 1, 256], strides = [1, 1, 1]} : vector<8x8x256xf32> to vector<8x1x256xf32>
    %170 = vector.shape_cast %169 : vector<8x1x256xf32> to vector<8x256xf32>
    %171 = arith.addf %168, %170 : vector<8x256xf32>
    %172 = vector.extract_strided_slice %171 {offsets = [0, 0], sizes = [8, 64], strides = [1, 1]} : vector<8x256xf32> to vector<8x64xf32>
    %173 = arith.negf %172 : vector<8x64xf32>
    %174 = math.exp %173 : vector<8x64xf32>
    %cst_38 = arith.constant 1.000000e+00 : f32
    %175 = vector.broadcast %cst_38 : f32 to vector<8x64xf32>
    %176 = arith.addf %175, %174 : vector<8x64xf32>
    %177 = arith.divf %175, %176 : vector<8x64xf32>
    %178 = vector.extract_strided_slice %171 {offsets = [0, 64], sizes = [8, 64], strides = [1, 1]} : vector<8x256xf32> to vector<8x64xf32>
    %179 = arith.negf %178 : vector<8x64xf32>
    %180 = math.exp %179 : vector<8x64xf32>
    %cst_39 = arith.constant 1.000000e+00 : f32
    %181 = vector.broadcast %cst_39 : f32 to vector<8x64xf32>
    %182 = arith.addf %181, %180 : vector<8x64xf32>
    %183 = arith.divf %181, %182 : vector<8x64xf32>
    %184 = vector.extract_strided_slice %171 {offsets = [0, 128], sizes = [8, 64], strides = [1, 1]} : vector<8x256xf32> to vector<8x64xf32>
    %185 = math.tanh %184 : vector<8x64xf32>
    %186 = vector.extract_strided_slice %171 {offsets = [0, 192], sizes = [8, 64], strides = [1, 1]} : vector<8x256xf32> to vector<8x64xf32>
    %187 = arith.negf %186 : vector<8x64xf32>
    %188 = math.exp %187 : vector<8x64xf32>
    %cst_40 = arith.constant 1.000000e+00 : f32
    %189 = vector.broadcast %cst_40 : f32 to vector<8x64xf32>
    %190 = arith.addf %189, %188 : vector<8x64xf32>
    %191 = arith.divf %189, %190 : vector<8x64xf32>
    %192 = arith.mulf %183, %164 : vector<8x64xf32>
    %193 = arith.mulf %177, %185 : vector<8x64xf32>
    %194 = arith.addf %192, %193 : vector<8x64xf32>
    %195 = math.tanh %194 : vector<8x64xf32>
    %196 = arith.mulf %191, %195 : vector<8x64xf32>
    %197 = arith.truncf %196 : vector<8x64xf32> to vector<8x64xbf16>
    %cst_41 = arith.constant dense<0.000000e+00> : vector<8x256xf32>
    %198 = tpu.matmul %197, %14, %cst_41 {dimension_numbers = #tpu.dot_dimension_numbers<[1], [0], [0], [1], [0, 0, 1, 1], [], []>} : vector<8x64xbf16>, vector<64x256xbf16>, vector<8x256xf32> -> vector<8x256xf32>
    %199 = vector.extract_strided_slice %13 {offsets = [0, 6, 0], sizes = [8, 1, 256], strides = [1, 1, 1]} : vector<8x8x256xf32> to vector<8x1x256xf32>
    %200 = vector.shape_cast %199 : vector<8x1x256xf32> to vector<8x256xf32>
    %201 = arith.addf %198, %200 : vector<8x256xf32>
    %202 = vector.extract_strided_slice %201 {offsets = [0, 0], sizes = [8, 64], strides = [1, 1]} : vector<8x256xf32> to vector<8x64xf32>
    %203 = arith.negf %202 : vector<8x64xf32>
    %204 = math.exp %203 : vector<8x64xf32>
    %cst_42 = arith.constant 1.000000e+00 : f32
    %205 = vector.broadcast %cst_42 : f32 to vector<8x64xf32>
    %206 = arith.addf %205, %204 : vector<8x64xf32>
    %207 = arith.divf %205, %206 : vector<8x64xf32>
    %208 = vector.extract_strided_slice %201 {offsets = [0, 64], sizes = [8, 64], strides = [1, 1]} : vector<8x256xf32> to vector<8x64xf32>
    %209 = arith.negf %208 : vector<8x64xf32>
    %210 = math.exp %209 : vector<8x64xf32>
    %cst_43 = arith.constant 1.000000e+00 : f32
    %211 = vector.broadcast %cst_43 : f32 to vector<8x64xf32>
    %212 = arith.addf %211, %210 : vector<8x64xf32>
    %213 = arith.divf %211, %212 : vector<8x64xf32>
    %214 = vector.extract_strided_slice %201 {offsets = [0, 128], sizes = [8, 64], strides = [1, 1]} : vector<8x256xf32> to vector<8x64xf32>
    %215 = math.tanh %214 : vector<8x64xf32>
    %216 = vector.extract_strided_slice %201 {offsets = [0, 192], sizes = [8, 64], strides = [1, 1]} : vector<8x256xf32> to vector<8x64xf32>
    %217 = arith.negf %216 : vector<8x64xf32>
    %218 = math.exp %217 : vector<8x64xf32>
    %cst_44 = arith.constant 1.000000e+00 : f32
    %219 = vector.broadcast %cst_44 : f32 to vector<8x64xf32>
    %220 = arith.addf %219, %218 : vector<8x64xf32>
    %221 = arith.divf %219, %220 : vector<8x64xf32>
    %222 = arith.mulf %213, %194 : vector<8x64xf32>
    %223 = arith.mulf %207, %215 : vector<8x64xf32>
    %224 = arith.addf %222, %223 : vector<8x64xf32>
    %225 = math.tanh %224 : vector<8x64xf32>
    %226 = arith.mulf %221, %225 : vector<8x64xf32>
    %227 = arith.truncf %226 : vector<8x64xf32> to vector<8x64xbf16>
    %cst_45 = arith.constant dense<0.000000e+00> : vector<8x256xf32>
    %228 = tpu.matmul %227, %14, %cst_45 {dimension_numbers = #tpu.dot_dimension_numbers<[1], [0], [0], [1], [0, 0, 1, 1], [], []>} : vector<8x64xbf16>, vector<64x256xbf16>, vector<8x256xf32> -> vector<8x256xf32>
    %229 = vector.extract_strided_slice %13 {offsets = [0, 7, 0], sizes = [8, 1, 256], strides = [1, 1, 1]} : vector<8x8x256xf32> to vector<8x1x256xf32>
    %230 = vector.shape_cast %229 : vector<8x1x256xf32> to vector<8x256xf32>
    %231 = arith.addf %228, %230 : vector<8x256xf32>
    %232 = vector.extract_strided_slice %231 {offsets = [0, 0], sizes = [8, 64], strides = [1, 1]} : vector<8x256xf32> to vector<8x64xf32>
    %233 = arith.negf %232 : vector<8x64xf32>
    %234 = math.exp %233 : vector<8x64xf32>
    %cst_46 = arith.constant 1.000000e+00 : f32
    %235 = vector.broadcast %cst_46 : f32 to vector<8x64xf32>
    %236 = arith.addf %235, %234 : vector<8x64xf32>
    %237 = arith.divf %235, %236 : vector<8x64xf32>
    %238 = vector.extract_strided_slice %231 {offsets = [0, 64], sizes = [8, 64], strides = [1, 1]} : vector<8x256xf32> to vector<8x64xf32>
    %239 = arith.negf %238 : vector<8x64xf32>
    %240 = math.exp %239 : vector<8x64xf32>
    %cst_47 = arith.constant 1.000000e+00 : f32
    %241 = vector.broadcast %cst_47 : f32 to vector<8x64xf32>
    %242 = arith.addf %241, %240 : vector<8x64xf32>
    %243 = arith.divf %241, %242 : vector<8x64xf32>
    %244 = vector.extract_strided_slice %231 {offsets = [0, 128], sizes = [8, 64], strides = [1, 1]} : vector<8x256xf32> to vector<8x64xf32>
    %245 = math.tanh %244 : vector<8x64xf32>
    %246 = vector.extract_strided_slice %231 {offsets = [0, 192], sizes = [8, 64], strides = [1, 1]} : vector<8x256xf32> to vector<8x64xf32>
    %247 = arith.negf %246 : vector<8x64xf32>
    %248 = math.exp %247 : vector<8x64xf32>
    %cst_48 = arith.constant 1.000000e+00 : f32
    %249 = vector.broadcast %cst_48 : f32 to vector<8x64xf32>
    %250 = arith.addf %249, %248 : vector<8x64xf32>
    %251 = arith.divf %249, %250 : vector<8x64xf32>
    %252 = arith.mulf %243, %224 : vector<8x64xf32>
    %253 = arith.mulf %237, %245 : vector<8x64xf32>
    %254 = arith.addf %252, %253 : vector<8x64xf32>
    %255 = math.tanh %254 : vector<8x64xf32>
    %256 = arith.mulf %251, %255 : vector<8x64xf32>
    %257 = arith.truncf %256 : vector<8x64xf32> to vector<8x64xbf16>
    %c0_49 = arith.constant 0 : index
    %c0_50 = arith.constant 0 : index
    %258 = vector.load %arg7[%c0_49, %c0_50] : memref<64x128xbf16, #tpu.memory_space<vmem>>, vector<64x128xbf16>
    %cst_51 = arith.constant dense<0.000000e+00> : vector<8x128xf32>
    %259 = tpu.matmul %257, %258, %cst_51 {dimension_numbers = #tpu.dot_dimension_numbers<[1], [0], [0], [1], [0, 0, 1, 1], [], []>} : vector<8x64xbf16>, vector<64x128xbf16>, vector<8x128xf32> -> vector<8x128xf32>
    %260 = arith.addf %5, %259 : vector<8x128xf32>
    %c0_52 = arith.constant 0 : index
    %c0_53 = arith.constant 0 : index
    %261 = vector.load %arg9[%c0_52, %c0_53] : memref<8x128xf32, #tpu.memory_space<vmem>>, vector<8x128xf32>
    tpu.vector_store %arg9[%c0_52, %c0_53], %260 {strides = array<i32>} : memref<8x128xf32, #tpu.memory_space<vmem>>, vector<8x128xf32>,
    return
  }
  func.func @transform_0(%arg0: i32) -> (i32, i32, i32) {
    %c0_i32 = arith.constant 0 : i32
    %c0_i32_0 = arith.constant 0 : i32
    %c0_i32_1 = arith.constant 0 : i32
    return %arg0, %c0_i32, %c0_i32_0 : i32, i32, i32
  }
  func.func @transform_1(%arg0: i32) -> (i32, i32) {
    %c0_i32 = arith.constant 0 : i32
    %c0_i32_0 = arith.constant 0 : i32
    return %arg0, %c0_i32 : i32, i32
  }
  func.func @transform_2(%arg0: i32) -> (i32, i32) {
    %c0_i32 = arith.constant 0 : i32
    %c0_i32_0 = arith.constant 0 : i32
    %c0_i32_1 = arith.constant 0 : i32
    return %c0_i32, %c0_i32_0 : i32, i32
  }
  func.func @transform_3(%arg0: i32) -> (i32, i32) {
    %c0_i32 = arith.constant 0 : i32
    %c0_i32_0 = arith.constant 0 : i32
    %c0_i32_1 = arith.constant 0 : i32
    return %c0_i32, %c0_i32_0 : i32, i32
  }
  func.func @transform_4(%arg0: i32) -> (i32, i32) {
    %c0_i32 = arith.constant 0 : i32
    %c0_i32_0 = arith.constant 0 : i32
    %c0_i32_1 = arith.constant 0 : i32
    return %c0_i32, %c0_i32_0 : i32, i32
  }
  func.func @transform_5(%arg0: i32) -> (i32, i32) {
    %c0_i32 = arith.constant 0 : i32
    %c0_i32_0 = arith.constant 0 : i32
    %c0_i32_1 = arith.constant 0 : i32
    return %c0_i32, %c0_i32_0 : i32, i32
  }
  func.func @transform_6(%arg0: i32) -> (i32, i32) {
    %c0_i32 = arith.constant 0 : i32
    %c0_i32_0 = arith.constant 0 : i32
    %c0_i32_1 = arith.constant 0 : i32
    return %c0_i32, %c0_i32_0 : i32, i32
  }
  func.func @transform_7(%arg0: i32) -> (i32, i32) {
    %c0_i32 = arith.constant 0 : i32
    %c0_i32_0 = arith.constant 0 : i32
    %c0_i32_1 = arith.constant 0 : i32
    return %c0_i32, %c0_i32_0 : i32, i32
  }
  func.func @transform_8(%arg0: i32) -> (i32, i32) {
    %c0_i32 = arith.constant 0 : i32
    %c0_i32_0 = arith.constant 0 : i32
    return %arg0, %c0_i32 : i32, i32
  }
}

</mosaic_0001>

<bundles_post_ra>
// kernel: single_task_dep_forward.1
= control target key start
LH: loop header
LB: loop body
LE: loop exit
PB: predicated region body
PF: predicated region fallthrough
CT: control target
= control target key end

     0   :  { %v1420_v1 = vmov 0   ;;  %vm54_vm0 = vcmask 261120   ;;  %v112_v17 = vlaneseq  ;;  %vm312_vm1 = vcmask 1041409   ;;  %s2042_s2 = inlined_call_operand.vmem [shape: bf16[32,256], index: 2, kind: input, shape index: {}]   ;;  %s2043_s0 = inlined_call_operand.vmem [shape: bf16[8,8,32], index: 0, kind: input, shape index: {}]   ;;  %s2044_s3 = inlined_call_operand.vmem [shape: bf16[64,256], index: 3, kind: input, shape index: {}]   ;;  %s2045_s4 = inlined_call_operand.vmem [shape: f32[1,256], index: 4, kind: input, shape index: {}]   ;;  %s2046_s5 = inlined_call_operand.vmem [shape: bf16[32,128], index: 5, kind: input, shape index: {}]   ;;  %s2047_s1 = inlined_call_operand.vmem [shape: bf16[8,32], index: 1, kind: input, shape index: {}]   ;;  %s2048_s6 = inlined_call_operand.vmem [shape: bf16[64,128], index: 6, kind: input, shape index: {}]   ;;  %s2049_s7 = inlined_call_operand.vmem [shape: f32[1,128], index: 7, kind: input, shape index: {}]   ;;  %s2050_s8 = inlined_call_operand.vmem [shape: f32[8,128], index: 8, kind: output, shape index: {}]  }
   0x1   :  { %v1289_v0 = vld [vmem:[%s2042_s2 + $0x4] ss:$8 sps:$4 sm:$0xff]   ;;  %206 = vmatprep.mubr.bf16.mxu1 %v1420_v1  ;;  %v1291_v2 = vld [vmem:[%s2042_s2] ss:$8 sps:$4 sm:$0xff]   ;;  %v1292_v3 = vld [vmem:[%s2042_s2 + $0x14] ss:$8 sps:$4 sm:$0xff]  }
   0x2   :  { %174 = vmatprep.subr.bf16.mxu1 %v1289_v0  ;;  %v1294_v4 = vld [vmem:[%s2042_s2 + $0x10] ss:$8 sps:$4 sm:$0xff]   ;;  %v1485_v5 = vld [vmem:[%s2044_s3 + $0x4] ss:$8 sps:$4 sm:$0xff]   ;;  %v1493_v7 = vld [vmem:[%s2044_s3] ss:$8 sps:$4 sm:$0xff]  }
   0x3   :  { %175 = vmatpush1.bf16.msra.mxu1 %v1291_v2  ;;  %v1295_v6 = vld [vmem:[%s2043_s0] sm:$0xff]   ;;  %v1499_v8 = vld [vmem:[%s2044_s3 + $0x14] ss:$8 sps:$4 sm:$0xff]   ;;  %v1507_v9 = vld [vmem:[%s2044_s3 + $0x10] ss:$8 sps:$4 sm:$0xff]   ;;  %v113_v18 = vshrl.u32 %v112_v17, 7 }
   0x4   :  { %176 = vmatprep.subr.bf16.mxu1 %v1292_v3  ;;  %v1513_v10 = vld [vmem:[%s2044_s3 + $0x24] ss:$8 sps:$4 sm:$0xff]   ;;  %v1522_v12 = vld [vmem:[%s2044_s3 + $0x20] ss:$8 sps:$4 sm:$0xff]   ;;  %v1528_v13 = vld [vmem:[%s2044_s3 + $0x34] ss:$8 sps:$4 sm:$0xff]  }
   0x5   :  { %v1299_v11 = vld [vmem:[%s2043_s0 + $0x8] sm:$0xff]   ;;  %v1536_v14 = vld [vmem:[%s2044_s3 + $0x30] ss:$8 sps:$4 sm:$0xff]   ;;  %v114_v19 = vsub.s32 0, %v113_v18  ;;  %v110_v20 = vld [vmem:[%s2045_s4] sm:$0x3] }
   0x6   :  { %v1303_v15 = vld [vmem:[%s2043_s0 + $0x10] sm:$0xff]   ;;  %v1307_v16 = vld [vmem:[%s2043_s0 + $0x18] sm:$0xff]   ;;  %v118_v21 = vsub.s32 1, %v113_v18  ;;  %vm315_vm2 = vcmask 1042434   ;;  %vm318_vm3 = vcmask 1043459   ;;  %vm321_vm4 = vcmask 1044484  }
   0x7   :  { %177 = vmatpush1.bf16.msra.mxu1 %v1294_v4  ;;  %v1564_v22 = vrot.slane %v110_v20, %v114_v19  ;;  %vm324_vm5 = vcmask 1045509   ;;  %vm327_vm6 = vcmask 1046534   ;;  %vm330_vm7 = vcmask 1047559   ;;  %s1421_s4 = smov 64  }
   0x8   :  { %352 = vmatprep.subr.bf16.mxu1 %v1485_v5  ;;  %v1566_v23 = vrot.slane %v110_v20, %v118_v21  ;;  %vm1423_vm8 = vmmov 0   ;;  %vm348_vm9 = vcmask 523264  }
   0xa   :  { %1212 = vmatmul.mubr.msk.bf16.vlgmr.msra.gmra.mrb[0].mxu1 %vm54_vm0, %v1295_v6 }
   0xb   :  { %353 = vmatpush1.bf16.msra.mxu1 %v1493_v7  ;;  %216 = vmatprep.mubr.bf16.mxu1 %v1420_v1 }
   0xc   :  { %354 = vmatprep.subr.bf16.mxu1 %v1499_v8 }
   0xf   :  { %355 = vmatpush1.bf16.msra.mxu1 %v1507_v9 }
  0x10   :  { %356 = vmatprep.subr.bf16.mxu1 %v1513_v10 }
  0x12   :  { %1213 = vmatmul.mubr.msk.bf16.gmra.mrb[4].mxu1 %vm54_vm0, %v1299_v11 }
  0x13   :  { %226 = vmatprep.mubr.bf16.mxu1 %v1420_v1  ;;  %357 = vmatpush1.bf16.msra.mxu1 %v1522_v12 }
  0x14   :  { %358 = vmatprep.subr.bf16.mxu1 %v1528_v13 }
  0x17   :  { %359 = vmatpush1.bf16.msra.mxu1 %v1536_v14 }
  0x18   :  { %552 = vmatprep.subr.bf16.mxu1 %v1485_v5 }
  0x1a   :  { %1214 = vmatmul.mubr.msk.bf16.gmra.mrb[8].mxu1 %vm54_vm0, %v1303_v15 }
  0x1b   :  { %236 = vmatprep.mubr.bf16.mxu1 %v1420_v1 }
  0x22   :  { %1215 = vmatmul.mubr.msk.bf16.gmra.mrb[12].mxu1 %vm54_vm0, %v1307_v16 }
  0x23   :  { %384 = vmatprep.mubr.bf16.mxu1 %v1420_v1 }
  0x2a   :  { %385 = vmatmul.mubr.bf16.vlgmr.msra.gmra.mrb[16].mxu1 %v1420_v1 }
  0x2b   :  { %553 = vmatpush1.bf16.msra.mxu1 %v1493_v7  ;;  %584 = vmatprep.mubr.bf16.mxu1 %v1420_v1 }
  0x2c   :  { %554 = vmatprep.subr.bf16.mxu1 %v1499_v8 }
  0x2f   :  { %555 = vmatpush1.bf16.msra.mxu1 %v1507_v9 }
  0x30   :  { %556 = vmatprep.subr.bf16.mxu1 %v1513_v10 }
  0x33   :  { %557 = vmatpush1.bf16.msra.mxu1 %v1522_v12 }
  0x34   :  { %558 = vmatprep.subr.bf16.mxu1 %v1528_v13 }
  0x37   :  { %559 = vmatpush1.bf16.msra.mxu1 %v1536_v14 }
  0x38   :  { %752 = vmatprep.subr.bf16.mxu1 %v1485_v5 }
  0xdd   :  { %v208_v24 = vpop.f32.mrb[0].mxu1 }
  0xde   :  { %v1569_v25 = vadd.f32 %v208_v24, %v1564_v22  ;;  %v210_v26 = vpop.f32.mrb[1].mxu1 }
  0xdf   :  { %v1572_v27 = vadd.f32 %v210_v26, %v1566_v23  ;;  %v212_v28 = vpop.f32.mrb[2].mxu1 }
  0xe0   :  { %v1575_v29 = vadd.f32 %v212_v28, %v1564_v22  ;;  %v214_v30 = vpop.f32.mrb[3].mxu1  ;;  %v419_v31 = vrot.slane %v1569_v25, 1  ;;  %v519_v32 = vrot.slane %v1569_v25, 2  ;;  %v619_v33 = vrot.slane %v1569_v25, 3 }
  0xe1   :  { %v1581_v34 = vadd.f32 %v214_v30, %v1566_v23  ;;  %v433_v35 = vrot.slane %v1572_v27, 1  ;;  %v533_v36 = vrot.slane %v1572_v27, 2  ;;  %v633_v37 = vrot.slane %v1572_v27, 3 }
  0xe2   :  { %v311_v38 = vrot.slane %v1575_v29, 7  ;;  %v420_v39 = vsel %vm312_vm1, %v1575_v29, %v419_v31  ;;  %v520_v40 = vrot.slane %v1575_v29, 1  ;;  %v620_v41 = vrot.slane %v1575_v29, 2 }
  0xe3   :  { %v332_v42 = vrot.slane %v1581_v34, 7  ;;  %v434_v43 = vsel %vm312_vm1, %v1581_v34, %v433_v35  ;;  %v534_v44 = vrot.slane %v1581_v34, 1  ;;  %v634_v45 = vrot.slane %v1581_v34, 2 }
  0xe4   :  { %v313_v46 = vsel %vm312_vm1, %v311_v38, %v1569_v25  ;;  %v521_v47 = vsel %vm312_vm1, %v520_v40, %v519_v32  ;;  %v621_v48 = vsel %vm312_vm1, %v620_v41, %v619_v33  ;;  %v719_v49 = vrot.slane %v1569_v25, 4 }
  0xe5   :  { %v218_v50 = vpop.f32.mrb[4].mxu1  ;;  %v333_v51 = vsel %vm312_vm1, %v332_v42, %v1572_v27  ;;  %v535_v52 = vsel %vm312_vm1, %v534_v44, %v533_v36  ;;  %v635_v53 = vsel %vm312_vm1, %v634_v45, %v633_v37  ;;  %v720_v54 = vrot.slane %v1575_v29, 3 }
  0xe6   :  { %v1607_v55 = vadd.f32 %v218_v50, %v1564_v22  ;;  %v220_v56 = vpop.f32.mrb[5].mxu1  ;;  %v733_v60 = vrot.slane %v1572_v27, 4  ;;  %v734_v61 = vrot.slane %v1581_v34, 3 }
  0xe7   :  { %v1610_v57 = vadd.f32 %v220_v56, %v1566_v23  ;;  %v222_v58 = vpop.f32.mrb[6].mxu1  ;;  %v1613_v59 = vsel %vm312_vm1, %v720_v54, %v719_v49 }
  0xe8   :  { %v1618_v62 = vadd.f32 %v222_v58, %v1564_v22  ;;  %v224_v63 = vpop.f32.mrb[7].mxu1  ;;  %v314_v0 = vrot.slane %v1607_v55, 6  ;;  %v421_v2 = vrot.slane %v1607_v55, 7  ;;  %v522_v3 = vsel %vm315_vm2, %v1607_v55, %v521_v47 }
  0xe9   :  { %v1625_v4 = vadd.f32 %v224_v63, %v1566_v23  ;;  %v334_v6 = vrot.slane %v1610_v57, 6  ;;  %v435_v11 = vrot.slane %v1610_v57, 7  ;;  %v536_v15 = vsel %vm315_vm2, %v1610_v57, %v535_v52 }
  0xea   :  { %v316_v16 = vsel %vm315_vm2, %v314_v0, %v313_v46  ;;  %v317_v17 = vrot.slane %v1618_v62, 5  ;;  %v422_v18 = vsel %vm315_vm2, %v421_v2, %v420_v39  ;;  %v423_v19 = vrot.slane %v1618_v62, 6 }
  0xeb   :  { %v335_v20 = vsel %vm315_vm2, %v334_v6, %v333_v51  ;;  %v336_v21 = vrot.slane %v1625_v4, 5  ;;  %v436_v24 = vsel %vm315_vm2, %v435_v11, %v434_v43  ;;  %v437_v26 = vrot.slane %v1625_v4, 6 }
  0xec   :  { %v319_v28 = vsel %vm318_vm3, %v317_v17, %v316_v16  ;;  %v424_v30 = vsel %vm318_vm3, %v423_v19, %v422_v18  ;;  %v523_v31 = vrot.slane %v1618_v62, 7  ;;  %v537_v32 = vrot.slane %v1625_v4, 7 }
  0xed   :  { %v228_v33 = vpop.f32.mrb[8].mxu1  ;;  %v337_v35 = vsel %vm318_vm3, %v336_v21, %v335_v20  ;;  %v438_v36 = vsel %vm318_vm3, %v437_v26, %v436_v24  ;;  %v622_v37 = vrot.slane %v1607_v55, 1  ;;  %v636_v38 = vrot.slane %v1610_v57, 1 }
  0xee   :  { %v1648_v39 = vadd.f32 %v228_v33, %v1564_v22  ;;  %v230_v40 = vpop.f32.mrb[9].mxu1  ;;  %v524_v41 = vsel %vm318_vm3, %v523_v31, %v522_v3  ;;  %v538_v42 = vsel %vm318_vm3, %v537_v32, %v536_v15  ;;  %v722_v43 = vrot.slane %v1607_v55, 2 }
  0xef   :  { %v1654_v44 = vadd.f32 %v230_v40, %v1566_v23  ;;  %v232_v45 = vpop.f32.mrb[10].mxu1  ;;  %v623_v46 = vsel %vm315_vm2, %v622_v37, %v621_v48  ;;  %v637_v47 = vsel %vm315_vm2, %v636_v38, %v635_v53  ;;  %v724_v49 = vrot.slane %v1618_v62, 1 }
  0xf0   :  { %v1660_v50 = vadd.f32 %v232_v45, %v1564_v22  ;;  %v234_v51 = vpop.f32.mrb[11].mxu1  ;;  %v320_v52 = vrot.slane %v1648_v39, 4  ;;  %v425_v54 = vrot.slane %v1648_v39, 5  ;;  %v525_v56 = vrot.slane %v1648_v39, 6 }
  0xf1   :  { %v1666_v58 = vadd.f32 %v234_v51, %v1566_v23  ;;  %v338_v48 = vrot.slane %v1654_v44, 4  ;;  %v439_v53 = vrot.slane %v1654_v44, 5  ;;  %v539_v63 = vrot.slane %v1654_v44, 6 }
  0xf2   :  { %v322_v0 = vsel %vm321_vm4, %v320_v52, %v319_v28  ;;  %v323_v2 = vrot.slane %v1660_v50, 3  ;;  %v426_v3 = vsel %vm321_vm4, %v425_v54, %v424_v30  ;;  %v427_v6 = vrot.slane %v1660_v50, 4 }
  0xf3   :  { %v339_v11 = vsel %vm321_vm4, %v338_v48, %v337_v35  ;;  %v340_v15 = vrot.slane %v1666_v58, 3  ;;  %v440_v16 = vsel %vm321_vm4, %v439_v53, %v438_v36  ;;  %v441_v17 = vrot.slane %v1666_v58, 4 }
  0xf4   :  { %v325_v18 = vsel %vm324_vm5, %v323_v2, %v322_v0  ;;  %v428_v19 = vsel %vm324_vm5, %v427_v6, %v426_v3  ;;  %v526_v20 = vsel %vm321_vm4, %v525_v56, %v524_v41  ;;  %v527_v21 = vrot.slane %v1660_v50, 5 }
  0xf5   :  { %v238_v24 = vpop.f32.mrb[12].mxu1  ;;  %v341_v26 = vsel %vm324_vm5, %v340_v15, %v339_v11  ;;  %v442_v28 = vsel %vm324_vm5, %v441_v17, %v440_v16  ;;  %v540_v30 = vsel %vm321_vm4, %v539_v63, %v538_v42  ;;  %v541_v31 = vrot.slane %v1666_v58, 5 }
  0xf6   :  { %v1688_v32 = vadd.f32 %v238_v24, %v1564_v22  ;;  %v240_v33 = vpop.f32.mrb[13].mxu1  ;;  %v528_v35 = vsel %vm324_vm5, %v527_v21, %v526_v20  ;;  %v624_v36 = vsel %vm318_vm3, %v1618_v62, %v623_v46  ;;  %v625_v37 = vrot.slane %v1648_v39, 7 }
  0xf7   :  { %v1695_v38 = vadd.f32 %v240_v33, %v1566_v23  ;;  %v242_v40 = vpop.f32.mrb[14].mxu1  ;;  %v542_v41 = vsel %vm324_vm5, %v541_v31, %v540_v30  ;;  %v627_v42 = vrot.slane %v1660_v50, 6  ;;  %v638_v45 = vsel %vm318_vm3, %v1625_v4, %v637_v47 }
  0xf8   :  { %v1702_v51 = vadd.f32 %v242_v40, %v1564_v22  ;;  %v244_v52 = vpop.f32.mrb[15].mxu1  ;;  %v326_v54 = vrot.slane %v1688_v32, 2  ;;  %v429_v46 = vrot.slane %v1688_v32, 3  ;;  %v529_v56 = vrot.slane %v1688_v32, 4 }
  0xf9   :  { %v1708_v48 = vadd.f32 %v244_v52, %v1566_v23  ;;  %v342_v53 = vrot.slane %v1695_v38, 2  ;;  %v443_v63 = vrot.slane %v1695_v38, 3  ;;  %v543_v0 = vrot.slane %v1695_v38, 4 }
  0xfa   :  { %v328_v47 = vsel %vm327_vm6, %v326_v54, %v325_v18  ;;  %v329_v22 = vrot.slane %v1702_v51, 1  ;;  %v430_v2 = vsel %vm327_vm6, %v429_v46, %v428_v19  ;;  %v431_v3 = vrot.slane %v1702_v51, 2 }
  0xfb   :  { %v343_v6 = vsel %vm327_vm6, %v342_v53, %v341_v26  ;;  %v344_v11 = vrot.slane %v1708_v48, 1  ;;  %v444_v23 = vsel %vm327_vm6, %v443_v63, %v442_v28  ;;  %v445_v15 = vrot.slane %v1708_v48, 2 }
  0xfc   :  { %v331_v16 = vsel %vm330_vm7, %v329_v22, %v328_v47  ;;  %v1723_v17 = vsel %vm330_vm7, %v431_v3, %v430_v2  ;;  %v530_v18 = vsel %vm327_vm6, %v529_v56, %v528_v35  ;;  %v531_v20 = vrot.slane %v1702_v51, 3 }
  0xfd   :  { %v386_v19 = vpop.f32.mrb[16].mxu1  ;;  %v345_v21 = vsel %vm330_vm7, %v344_v11, %v343_v6  ;;  %v1729_v24 = vsel %vm330_vm7, %v445_v15, %v444_v23  ;;  %v544_v26 = vsel %vm327_vm6, %v543_v0, %v542_v41  ;;  %v545_v28 = vrot.slane %v1708_v48, 3 }
  0xfe   :  { %v387_v30 = vadd.f32 %v386_v19, %v331_v16  ;;  %v388_v31 = vpop.f32.mrb[17].mxu1  ;;  %v1734_v33 = vsel %vm330_vm7, %v531_v20, %v530_v18  ;;  %v626_v40 = vsel %vm321_vm4, %v625_v37, %v624_v36  ;;  %v629_v35 = vrot.slane %v1688_v32, 5 }
  0xff   :  { %v1738_v52 = vadd.f32 %v388_v31, %v345_v21  ;;  %v390_v54 = vpop.f32.mrb[18].mxu1  ;;  %v1741_v46 = vsel %vm330_vm7, %v545_v28, %v544_v26  ;;  %v628_v56 = vsel %vm324_vm5, %v627_v42, %v626_v40  ;;  %v631_v41 = vrot.slane %v1702_v51, 4 }
 0x100   :  { %v1224_v53 = vmul.f32 -1.442695, %v387_v30  ;;  %v391_v63 = vpop.f32.mrb[19].mxu1  ;;  %v630_v0 = vsel %vm327_vm6, %v629_v35, %v628_v56  ;;  %v639_v47 = vrot.slane %v1654_v44, 7  ;;  %v641_v36 = vrot.slane %v1666_v58, 6 }
 0x101   :  { %v1749_v37 = vsel %vm330_vm7, %v631_v41, %v630_v0  ;;  %v643_v22 = vrot.slane %v1695_v38, 5  ;;  %v819_v2 = vrot.slane %v1569_v25, 5  ;;  %v820_v3 = vrot.slane %v1575_v29, 4 }
 0x102   :  { %1317 = vpow2.f32 %v1224_v53  ;;  %v640_v42 = vsel %vm321_vm4, %v639_v47, %v638_v45  ;;  %v645_v6 = vrot.slane %v1708_v48, 4  ;;  %v723_v11 = vsel %vm315_vm2, %v722_v43, %v1613_v59 }
 0x103   :  { %v642_v23 = vsel %vm324_vm5, %v641_v36, %v640_v42  ;;  %v725_v15 = vsel %vm318_vm3, %v724_v49, %v723_v11  ;;  %v727_v16 = vrot.slane %v1660_v50, 7  ;;  %v833_v18 = vrot.slane %v1572_v27, 5 }
 0x104   :  { %v644_v20 = vsel %vm327_vm6, %v643_v22, %v642_v23  ;;  %v726_v45 = vsel %vm321_vm4, %v1648_v39, %v725_v15  ;;  %v729_v19 = vrot.slane %v1688_v32, 6  ;;  %v731_v21 = vrot.slane %v1702_v51, 5 }
 0x105   :  { %v1772_v59 = vsel %vm330_vm7, %v645_v6, %v644_v20  ;;  %v728_v43 = vsel %vm324_vm5, %v727_v16, %v726_v45  ;;  %v735_v49 = vsel %vm312_vm1, %v734_v61, %v733_v60  ;;  %v736_v26 = vrot.slane %v1610_v57, 2 }
 0x106   :  { %v730_v28 = vsel %vm327_vm6, %v729_v19, %v728_v43  ;;  %v738_v30 = vrot.slane %v1625_v4, 1  ;;  %v741_v31 = vrot.slane %v1666_v58, 7  ;;  %v743_v40 = vrot.slane %v1695_v38, 6 }
 0x107   :  { %v1786_v35 = vsel %vm330_vm7, %v731_v21, %v730_v28  ;;  %v737_v54 = vsel %vm315_vm2, %v736_v26, %v735_v49  ;;  %v745_v56 = vrot.slane %v1708_v48, 5  ;;  %v821_v41 = vsel %vm312_vm1, %v820_v3, %v819_v2 }
 0x108   :  { %v739_v60 = vsel %vm318_vm3, %v738_v30, %v737_v54  ;;  %v822_v61 = vrot.slane %v1607_v55, 3  ;;  %v824_v53 = vrot.slane %v1618_v62, 2  ;;  %v826_v63 = vrot.slane %v1648_v39, 1 }
 0x109   :  { %v740_v0 = vsel %vm321_vm4, %v1654_v44, %v739_v60  ;;  %v829_v47 = vrot.slane %v1688_v32, 7  ;;  %v831_v36 = vrot.slane %v1702_v51, 6  ;;  %v834_v22 = vrot.slane %v1581_v34, 4 }
 0x10a   :  { %v742_v42 = vsel %vm324_vm5, %v741_v31, %v740_v0  ;;  %v823_v2 = vsel %vm315_vm2, %v822_v61, %v821_v41  ;;  %v836_v3 = vrot.slane %v1610_v57, 3  ;;  %v838_v6 = vrot.slane %v1625_v4, 2 }
 0x10b   :  { %v744_v11 = vsel %vm327_vm6, %v743_v40, %v742_v42  ;;  %v825_v23 = vsel %vm318_vm3, %v824_v53, %v823_v2  ;;  %v835_v15 = vsel %vm312_vm1, %v834_v22, %v833_v18  ;;  %v840_v16 = vrot.slane %v1654_v44, 1 }
 0x10c   :  { %v1318_v20 = vpop.eup %1317  ;;  %v1809_v45 = vsel %vm330_vm7, %v745_v56, %v744_v11  ;;  %v827_v19 = vsel %vm321_vm4, %v826_v63, %v825_v23  ;;  %v837_v21 = vsel %vm315_vm2, %v836_v3, %v835_v15  ;;  %v843_v43 = vrot.slane %v1695_v38, 7 }
 0x10d   :  { %v396_v49 = vadd.f32 1.0, %v1318_v20  ;;  %v828_v26 = vsel %vm324_vm5, %v1660_v50, %v827_v19  ;;  %v839_v28 = vsel %vm318_vm3, %v838_v6, %v837_v21  ;;  %v845_v18 = vrot.slane %v1708_v48, 6 }
 0x10e   :  { %1319 = vtanh.f32 %v1738_v52  ;;  %v830_v30 = vsel %vm327_vm6, %v829_v47, %v828_v26  ;;  %v841_v31 = vsel %vm321_vm4, %v840_v16, %v839_v28  ;;  %v919_v40 = vrot.slane %v1569_v25, 6 }
 0x10f   :  { %1321 = vrcp.f32 %v396_v49  ;;  %v1823_v54 = vsel %vm330_vm7, %v831_v36, %v830_v30  ;;  %v842_v56 = vsel %vm324_vm5, %v1666_v58, %v841_v31  ;;  %v920_v41 = vrot.slane %v1575_v29, 5 }
 0x110   :  { %v844_v60 = vsel %vm327_vm6, %v843_v43, %v842_v56  ;;  %v922_v61 = vrot.slane %v1607_v55, 4  ;;  %v924_v53 = vrot.slane %v1618_v62, 3  ;;  %v926_v47 = vrot.slane %v1648_v39, 2 }
 0x111   :  { %v1832_v63 = vsel %vm330_vm7, %v845_v18, %v844_v60  ;;  %v921_v0 = vsel %vm312_vm1, %v920_v41, %v919_v40  ;;  %v928_v36 = vrot.slane %v1660_v50, 1  ;;  %v931_v42 = vrot.slane %v1702_v51, 7 }
 0x112   :  { %v923_v22 = vsel %vm315_vm2, %v922_v61, %v921_v0  ;;  %v933_v2 = vrot.slane %v1572_v27, 6  ;;  %v934_v3 = vrot.slane %v1581_v34, 5  ;;  %v936_v11 = vrot.slane %v1610_v57, 4 }
 0x113   :  { %v925_v6 = vsel %vm318_vm3, %v924_v53, %v923_v22  ;;  %v938_v23 = vrot.slane %v1625_v4, 3  ;;  %v940_v15 = vrot.slane %v1654_v44, 2  ;;  %v942_v19 = vrot.slane %v1666_v58, 1 }
 0x114   :  { %v927_v16 = vsel %vm321_vm4, %v926_v47, %v925_v6  ;;  %v935_v20 = vsel %vm312_vm1, %v934_v3, %v933_v2  ;;  %v945_v21 = vrot.slane %v1708_v48, 7  ;;  %v1019_v26 = vrot.slane %v1569_v25, 7 }
 0x115   :  { %v929_v43 = vsel %vm324_vm5, %v928_v36, %v927_v16  ;;  %v937_v49 = vsel %vm315_vm2, %v936_v11, %v935_v20  ;;  %v1020_v28 = vrot.slane %v1575_v29, 6  ;;  %v1022_v31 = vrot.slane %v1607_v55, 5 }
 0x116   :  { %v930_v18 = vsel %vm327_vm6, %v1688_v32, %v929_v43  ;;  %v939_v30 = vsel %vm318_vm3, %v938_v23, %v937_v49  ;;  %v1024_v40 = vrot.slane %v1618_v62, 4  ;;  %v1026_v25 = vrot.slane %v1648_v39, 3  ;;  %v30_v43 = vld [vmem:[%s2047_s1] sm:$0xf] }
 0x117   :  { %v1859_v56 = vsel %vm330_vm7, %v931_v42, %v930_v18  ;;  %v941_v41 = vsel %vm321_vm4, %v940_v15, %v939_v30  ;;  %v1021_v60 = vsel %vm312_vm1, %v1020_v28, %v1019_v26  ;;  %v1028_v0 = vrot.slane %v1660_v50, 2 }
 0x118   :  { %v1320_v61 = vpop.eup %1319  ;;  %v943_v29 = vsel %vm324_vm5, %v942_v19, %v941_v41  ;;  %v1023_v53 = vsel %vm315_vm2, %v1022_v31, %v1021_v60  ;;  %v1030_v55 = vrot.slane %v1688_v32, 1  ;;  %v1033_v22 = vrot.slane %v1572_v27, 7 }
 0x119   :  { %v1322_v47 = vpop.eup %1321  ;;  %v944_v62 = vsel %vm327_vm6, %v1695_v38, %v943_v29  ;;  %v1025_v36 = vsel %vm318_vm3, %v1024_v40, %v1023_v53  ;;  %v1034_v42 = vrot.slane %v1581_v34, 6  ;;  %v1036_v6 = vrot.slane %v1610_v57, 5 }
 0x11a   :  { %v407_v39 = vmul.f32 %v1322_v47, %v1320_v61  ;;  %v1874_v2 = vsel %vm330_vm7, %v945_v21, %v944_v62  ;;  %v1027_v3 = vsel %vm321_vm4, %v1026_v25, %v1025_v36  ;;  %v1038_v11 = vrot.slane %v1625_v4, 4 }
 0x11b   :  { %v1029_v50 = vsel %vm324_vm5, %v1028_v0, %v1027_v3  ;;  %v1035_v32 = vsel %vm312_vm1, %v1034_v42, %v1033_v22  ;;  %v1040_v34 = vrot.slane %v1654_v44, 3  ;;  %v1042_v23 = vrot.slane %v1666_v58, 2  ;;  %v1311_v44 = vld [vmem:[%s2046_s5] sm:$0xff]  }
 0x11c   :  { %409 = vrot.lane.b32.xlu0 %v407_v39, %s1421_s4  ;;  %v1031_v27 = vsel %vm327_vm6, %v1030_v55, %v1029_v50  ;;  %v1037_v16 = vsel %vm315_vm2, %v1036_v6, %v1035_v32  ;;  %v1044_v20 = vrot.slane %v1695_v38, 1  ;;  %v1422_v21 = vmov 0.0  }
 0x11d   :  { %v1887_v15 = vsel %vm330_vm7, %v1702_v51, %v1031_v27  ;;  %v1039_v57 = vsel %vm318_vm3, %v1038_v11, %v1037_v16  ;;  %1260 = vmatprep.subr.bf16.mxu0 %v1422_v21  ;;  %1264 = vmatprep.mubr.msk.bf16.mxu0 %vm1423_vm8, %v1422_v21  ;;  %v1312_v51 = vld [vmem:[%s2046_s5 + $0x8] sm:$0xff]   ;;  %v406_v28 = vmul.f32 0.0, %v1322_v47 }
 0x11e   :  { %v1041_v4 = vsel %vm321_vm4, %v1040_v34, %v1039_v57  ;;  %1261 = vmatpush3.bf16.msra.mxu0 %v1311_v44 }
 0x11f   :  { %v1043_v19 = vsel %vm324_vm5, %v1042_v23, %v1041_v4  ;;  %1262 = vmatprep.subr.bf16.mxu0 %v1422_v21 }
 0x120   :  { %v1045_v58 = vsel %vm327_vm6, %v1044_v20, %v1043_v19 }
 0x121   :  { %v1903_v38 = vsel %vm330_vm7, %v1708_v48, %v1045_v58  ;;  %v1225_v48 = vmul.f32 -1.442695, %v1738_v52 }
 0x122   :  { %1263 = vmatpush3.bf16.msra.mxu0 %v1312_v51 }
 0x123   :  { %452 = vmatprep.subr.bf16.mxu0 %v1485_v5  ;;  %1323 = vpow2.f32 %v1225_v48 }
 0x125   :  { %1265 = vmatmul.mubr.msk.bf16.vlgmr.msra.gmra.mrb[0].mxu0 %vm54_vm0, %v30_v43 }
 0x126   :  { %453 = vmatpush1.bf16.msra.mxu0 %v1493_v7  ;;  %484 = vmatprep.mubr.bf16.mxu0 %v1420_v1 }
 0x127   :  { %454 = vmatprep.subr.bf16.mxu0 %v1499_v8 }
 0x12a   :  { %455 = vmatpush1.bf16.msra.mxu0 %v1507_v9 }
 0x12b   :  { %456 = vmatprep.subr.bf16.mxu0 %v1513_v10 }
 0x12d   :  { %v1324_v49 = vpop.eup %1323 }
 0x12e   :  { %457 = vmatpush1.bf16.msra.mxu0 %v1522_v12  ;;  %v403_v26 = vadd.f32 1.0, %v1324_v49 }
 0x12f   :  { %458 = vmatprep.subr.bf16.mxu0 %v1528_v13 }
 0x130   :  { %1325 = vrcp.f32 %v403_v26 }
 0x132   :  { %459 = vmatpush1.bf16.msra.mxu0 %v1536_v14 }
 0x133   :  { %652 = vmatprep.subr.bf16.mxu0 %v1485_v5 }
 0x13a   :  { %v1326_v31 = vpop.eup %1325 }
 0x18e   :  { %v410_v18 = vpop.permute.xlu0 %409 }
 0x18f   :  { %v412_v30 = vadd.f32 %v410_v18, %v406_v28 }
 0x191   :  { %1327 = vtanh.f32 %v412_v30 }
 0x19b   :  { %v1328_v40 = vpop.eup %1327 }
 0x19c   :  { %v414_v41 = vmul.f32 %v1328_v40, %v1326_v31 }
 0x19e   :  { %v415_v60 = vpack.c.bf16 %v414_v41, %v414_v41 }
 0x1a0   :  { %417 = vrot.lane.b32.xlu0 %v415_v60, %s1421_s4 }
 0x212   :  { %v418_v25 = vpop.permute.xlu0 %417 }
 0x213   :  { %1226 = vmatmul.mubr.msk.bf16.vlgmr.msra.gmra.mrb[4].mxu0 %vm348_vm9, %v418_v25 }
 0x214   :  { %653 = vmatpush1.bf16.msra.mxu0 %v1493_v7  ;;  %684 = vmatprep.mubr.bf16.mxu0 %v1420_v1 }
 0x215   :  { %654 = vmatprep.subr.bf16.mxu0 %v1499_v8 }
 0x218   :  { %655 = vmatpush1.bf16.msra.mxu0 %v1507_v9 }
 0x219   :  { %656 = vmatprep.subr.bf16.mxu0 %v1513_v10 }
 0x21c   :  { %657 = vmatpush1.bf16.msra.mxu0 %v1522_v12 }
 0x21d   :  { %658 = vmatprep.subr.bf16.mxu0 %v1528_v13 }
 0x220   :  { %659 = vmatpush1.bf16.msra.mxu0 %v1536_v14 }
 0x221   :  { %852 = vmatprep.subr.bf16.mxu0 %v1485_v5 }
 0x2e6   :  { %v486_v52 = vpop.f32.mrb[4].mxu0 }
 0x2e7   :  { %v487_v61 = vadd.f32 %v486_v52, %v1723_v17  ;;  %v488_v29 = vpop.f32.mrb[5].mxu0 }
 0x2e8   :  { %v489_v53 = vadd.f32 %v488_v29, %v1729_v24  ;;  %v490_v0 = vpop.f32.mrb[6].mxu0 }
 0x2e9   :  { %v1227_v55 = vmul.f32 -1.442695, %v487_v61  ;;  %v491_v47 = vpop.f32.mrb[7].mxu0 }
 0x2ea   :  { %v1228_v3 = vmul.f32 -1.442695, %v489_v53 }
 0x2eb   :  { %1329 = vpow2.f32 %v1227_v55 }
 0x2ec   :  { %1331 = vtanh.f32 %v489_v53 }
 0x2f5   :  { %v1330_v62 = vpop.eup %1329 }
 0x2f6   :  { %v496_v36 = vadd.f32 1.0, %v1330_v62  ;;  %v1332_v22 = vpop.eup %1331 }
 0x2f8   :  { %1333 = vrcp.f32 %v496_v36 }
 0x2f9   :  { %1335 = vpow2.f32 %v1228_v3 }
 0x302   :  { %v1334_v42 = vpop.eup %1333 }
 0x303   :  { %v507_v39 = vmul.f32 %v1334_v42, %v1332_v22  ;;  %v1336_v50 = vpop.eup %1335  ;;  %v506_v32 = vmul.f32 %v1334_v42, %v412_v30 }
 0x304   :  { %v503_v17 = vadd.f32 1.0, %v1336_v50 }
 0x305   :  { %509 = vrot.lane.b32.xlu1 %v507_v39, %s1421_s4 }
 0x306   :  { %1337 = vrcp.f32 %v503_v17 }
 0x310   :  { %v1338_v11 = vpop.eup %1337 }
 0x377   :  { %v510_v6 = vpop.permute.xlu1 %509 }
 0x378   :  { %v512_v24 = vadd.f32 %v510_v6, %v506_v32 }
 0x37a   :  { %1339 = vtanh.f32 %v512_v24 }
 0x384   :  { %v1340_v27 = vpop.eup %1339 }
 0x385   :  { %v514_v34 = vmul.f32 %v1340_v27, %v1338_v11 }
 0x387   :  { %v515_v23 = vpack.c.bf16 %v514_v34, %v514_v34 }
 0x389   :  { %517 = vrot.lane.b32.xlu1 %v515_v23, %s1421_s4 }
 0x3fb   :  { %v518_v16 = vpop.permute.xlu1 %517 }
 0x3fc   :  { %1229 = vmatmul.mubr.msk.bf16.vlgmr.msra.gmra.mrb[20].mxu1 %vm348_vm9, %v518_v16 }
 0x3fd   :  { %753 = vmatpush1.bf16.msra.mxu1 %v1493_v7  ;;  %784 = vmatprep.mubr.bf16.mxu1 %v1420_v1 }
 0x3fe   :  { %754 = vmatprep.subr.bf16.mxu1 %v1499_v8 }
 0x401   :  { %755 = vmatpush1.bf16.msra.mxu1 %v1507_v9 }
 0x402   :  { %756 = vmatprep.subr.bf16.mxu1 %v1513_v10 }
 0x405   :  { %757 = vmatpush1.bf16.msra.mxu1 %v1522_v12 }
 0x406   :  { %758 = vmatprep.subr.bf16.mxu1 %v1528_v13 }
 0x409   :  { %759 = vmatpush1.bf16.msra.mxu1 %v1536_v14 }
 0x40a   :  { %952 = vmatprep.subr.bf16.mxu1 %v1485_v5 }
 0x4cf   :  { %v586_v20 = vpop.f32.mrb[20].mxu1 }
 0x4d0   :  { %v587_v57 = vadd.f32 %v586_v20, %v1734_v33  ;;  %v588_v4 = vpop.f32.mrb[21].mxu1 }
 0x4d1   :  { %v589_v19 = vadd.f32 %v588_v4, %v1741_v46  ;;  %v590_v44 = vpop.f32.mrb[22].mxu1 }
 0x4d2   :  { %v1230_v58 = vmul.f32 -1.442695, %v587_v57  ;;  %v591_v51 = vpop.f32.mrb[23].mxu1 }
 0x4d3   :  { %v1231_v18 = vmul.f32 -1.442695, %v589_v19 }
 0x4d4   :  { %1341 = vpow2.f32 %v1230_v58 }
 0x4d5   :  { %1343 = vtanh.f32 %v589_v19 }
 0x4de   :  { %v1342_v43 = vpop.eup %1341 }
 0x4df   :  { %v596_v48 = vadd.f32 1.0, %v1342_v43  ;;  %v1344_v49 = vpop.eup %1343 }
 0x4e1   :  { %1345 = vrcp.f32 %v596_v48 }
 0x4e2   :  { %1347 = vpow2.f32 %v1231_v18 }
 0x4eb   :  { %v1346_v26 = vpop.eup %1345 }
 0x4ec   :  { %v607_v28 = vmul.f32 %v1346_v26, %v1344_v49  ;;  %v1348_v30 = vpop.eup %1347  ;;  %v606_v31 = vmul.f32 %v1346_v26, %v512_v24 }
 0x4ed   :  { %v603_v33 = vadd.f32 1.0, %v1348_v30  ;;  %v1413_v30 = vld [vmem:[%s2044_s3] ss:$8 sps:$4 sm:$0xff]  }
 0x4ee   :  { %609 = vrot.lane.b32.xlu0 %v607_v28, %s1421_s4 }
 0x4ef   :  { %1349 = vrcp.f32 %v603_v33  ;;  %v1414_v33 = vld [vmem:[%s2044_s3 + $0x14] ss:$8 sps:$4 sm:$0xff]  }
 0x4f9   :  { %v1350_v41 = vpop.eup %1349 }
 0x560   :  { %v610_v40 = vpop.permute.xlu0 %609 }
 0x561   :  { %v612_v46 = vadd.f32 %v610_v40, %v606_v31  ;;  %v1415_v31 = vld [vmem:[%s2044_s3 + $0x10] ss:$8 sps:$4 sm:$0xff]   ;;  %v1416_v40 = vld [vmem:[%s2044_s3 + $0x24] ss:$8 sps:$4 sm:$0xff]  }
 0x563   :  { %1351 = vtanh.f32 %v612_v46 }
 0x56d   :  { %v1352_v60 = vpop.eup %1351 }
 0x56e   :  { %v614_v25 = vmul.f32 %v1352_v60, %v1350_v41  ;;  %v1419_v41 = vld [vmem:[%s2044_s3 + $0x30] ss:$8 sps:$4 sm:$0xff]  }
 0x570   :  { %v615_v52 = vpack.c.bf16 %v614_v25, %v614_v25 }
 0x572   :  { %617 = vrot.lane.b32.xlu1 %v615_v52, %s1421_s4 }
 0x5e4   :  { %v618_v61 = vpop.permute.xlu1 %617 }
 0x5e5   :  { %1232 = vmatmul.mubr.msk.bf16.vlgmr.msra.gmra.mrb[8].mxu0 %vm348_vm9, %v618_v61 }
 0x5e6   :  { %853 = vmatpush1.bf16.msra.mxu0 %v1493_v7  ;;  %884 = vmatprep.mubr.bf16.mxu0 %v1420_v1 }
 0x5e7   :  { %854 = vmatprep.subr.bf16.mxu0 %v1499_v8 }
 0x5ea   :  { %855 = vmatpush1.bf16.msra.mxu0 %v1507_v9 }
 0x5eb   :  { %856 = vmatprep.subr.bf16.mxu0 %v1513_v10 }
 0x5ee   :  { %857 = vmatpush1.bf16.msra.mxu0 %v1522_v12 }
 0x5ef   :  { %858 = vmatprep.subr.bf16.mxu0 %v1528_v13 }
 0x5f2   :  { %859 = vmatpush1.bf16.msra.mxu0 %v1536_v14 }
 0x5f3   :  { %1052 = vmatprep.subr.bf16.mxu0 %v1485_v5 }
 0x6b8   :  { %v686_v29 = vpop.f32.mrb[8].mxu0 }
 0x6b9   :  { %v687_v53 = vadd.f32 %v686_v29, %v1749_v37  ;;  %v688_v0 = vpop.f32.mrb[9].mxu0 }
 0x6ba   :  { %v689_v55 = vadd.f32 %v688_v0, %v1772_v59  ;;  %v690_v47 = vpop.f32.mrb[10].mxu0 }
 0x6bb   :  { %v1233_v62 = vmul.f32 -1.442695, %v687_v53  ;;  %v691_v36 = vpop.f32.mrb[11].mxu0 }
 0x6bc   :  { %v1234_v5 = vmul.f32 -1.442695, %v689_v55 }
 0x6bd   :  { %1353 = vpow2.f32 %v1233_v62 }
 0x6be   :  { %1355 = vtanh.f32 %v689_v55 }
 0x6c7   :  { %v1354_v22 = vpop.eup %1353 }
 0x6c8   :  { %v696_v42 = vadd.f32 1.0, %v1354_v22  ;;  %v1356_v39 = vpop.eup %1355 }
 0x6ca   :  { %1357 = vrcp.f32 %v696_v42 }
 0x6cb   :  { %1359 = vpow2.f32 %v1234_v5 }
 0x6d4   :  { %v1358_v3 = vpop.eup %1357 }
 0x6d5   :  { %v707_v50 = vmul.f32 %v1358_v3, %v1356_v39  ;;  %v1360_v17 = vpop.eup %1359  ;;  %v706_v32 = vmul.f32 %v1358_v3, %v612_v46  ;;  %v1417_v46 = vld [vmem:[%s2044_s3 + $0x20] ss:$8 sps:$4 sm:$0xff]  }
 0x6d6   :  { %v703_v37 = vadd.f32 1.0, %v1360_v17 }
 0x6d7   :  { %709 = vrot.lane.b32.xlu0 %v707_v50, %s1421_s4 }
 0x6d8   :  { %1361 = vrcp.f32 %v703_v37 }
 0x6e2   :  { %v1362_v24 = vpop.eup %1361 }
 0x749   :  { %v710_v6 = vpop.permute.xlu0 %709 }
 0x74a   :  { %v712_v59 = vadd.f32 %v710_v6, %v706_v32 }
 0x74c   :  { %1363 = vtanh.f32 %v712_v59 }
 0x756   :  { %v1364_v11 = vpop.eup %1363 }
 0x757   :  { %v714_v27 = vmul.f32 %v1364_v11, %v1362_v24 }
 0x759   :  { %v715_v34 = vpack.c.bf16 %v714_v27, %v714_v27 }
 0x75b   :  { %717 = vrot.lane.b32.xlu1 %v715_v34, %s1421_s4 }
 0x7cd   :  { %v718_v23 = vpop.permute.xlu1 %717 }
 0x7ce   :  { %1235 = vmatmul.mubr.msk.bf16.vlgmr.msra.gmra.mrb[24].mxu1 %vm348_vm9, %v718_v23 }
 0x7cf   :  { %953 = vmatpush1.bf16.msra.mxu1 %v1493_v7  ;;  %984 = vmatprep.mubr.bf16.mxu1 %v1420_v1 }
 0x7d0   :  { %954 = vmatprep.subr.bf16.mxu1 %v1499_v8 }
 0x7d3   :  { %955 = vmatpush1.bf16.msra.mxu1 %v1507_v9 }
 0x7d4   :  { %956 = vmatprep.subr.bf16.mxu1 %v1513_v10 }
 0x7d7   :  { %957 = vmatpush1.bf16.msra.mxu1 %v1522_v12 }
 0x7d8   :  { %958 = vmatprep.subr.bf16.mxu1 %v1528_v13 }
 0x7db   :  { %959 = vmatpush1.bf16.msra.mxu1 %v1536_v14 }
 0x8a1   :  { %v786_v16 = vpop.f32.mrb[24].mxu1 }
 0x8a2   :  { %v787_v20 = vadd.f32 %v786_v16, %v1786_v35  ;;  %v788_v57 = vpop.f32.mrb[25].mxu1 }
 0x8a3   :  { %v789_v7 = vadd.f32 %v788_v57, %v1809_v45  ;;  %v790_v4 = vpop.f32.mrb[26].mxu1 }
 0x8a4   :  { %v1236_v19 = vmul.f32 -1.442695, %v787_v20  ;;  %v791_v44 = vpop.f32.mrb[27].mxu1 }
 0x8a5   :  { %v1237_v13 = vmul.f32 -1.442695, %v789_v7 }
 0x8a6   :  { %1365 = vpow2.f32 %v1236_v19 }
 0x8a7   :  { %1367 = vtanh.f32 %v789_v7 }
 0x8b0   :  { %v1366_v8 = vpop.eup %1365 }
 0x8b1   :  { %v796_v9 = vadd.f32 1.0, %v1366_v8  ;;  %v1368_v10 = vpop.eup %1367 }
 0x8b3   :  { %1369 = vrcp.f32 %v796_v9 }
 0x8b4   :  { %1371 = vpow2.f32 %v1237_v13 }
 0x8bd   :  { %v1370_v12 = vpop.eup %1369 }
 0x8be   :  { %v807_v58 = vmul.f32 %v1370_v12, %v1368_v10  ;;  %v1372_v14 = vpop.eup %1371  ;;  %v806_v51 = vmul.f32 %v1370_v12, %v712_v59 }
 0x8bf   :  { %v803_v35 = vadd.f32 1.0, %v1372_v14 }
 0x8c0   :  { %809 = vrot.lane.b32.xlu0 %v807_v58, %s1421_s4 }
 0x8c1   :  { %1373 = vrcp.f32 %v803_v35 }
 0x8cb   :  { %v1374_v48 = vpop.eup %1373 }
 0x932   :  { %v810_v43 = vpop.permute.xlu0 %809 }
 0x933   :  { %v812_v45 = vadd.f32 %v810_v43, %v806_v51 }
 0x935   :  { %1375 = vtanh.f32 %v812_v45 }
 0x93f   :  { %v1376_v49 = vpop.eup %1375 }
 0x940   :  { %v814_v26 = vmul.f32 %v1376_v49, %v1374_v48 }
 0x942   :  { %v815_v28 = vpack.c.bf16 %v814_v26, %v814_v26 }
 0x944   :  { %817 = vrot.lane.b32.xlu1 %v815_v28, %s1421_s4 }
 0x9b6   :  { %v818_v18 = vpop.permute.xlu1 %817 }
 0x9b7   :  { %1238 = vmatmul.mubr.msk.bf16.vlgmr.msra.gmra.mrb[12].mxu0 %vm348_vm9, %v818_v18 }
 0x9b8   :  { %1053 = vmatpush1.bf16.msra.mxu0 %v1413_v30  ;;  %1084 = vmatprep.mubr.bf16.mxu0 %v1420_v1  ;;  %v1418_v1 = vld [vmem:[%s2044_s3 + $0x34] ss:$8 sps:$4 sm:$0xff]  }
 0x9b9   :  { %1054 = vmatprep.subr.bf16.mxu0 %v1414_v33 }
 0x9bc   :  { %1055 = vmatpush1.bf16.msra.mxu0 %v1415_v31 }
 0x9bd   :  { %1056 = vmatprep.subr.bf16.mxu0 %v1416_v40 }
 0x9c0   :  { %1057 = vmatpush1.bf16.msra.mxu0 %v1417_v46  ;;  %v1315_v46 = vld [vmem:[%s2048_s6 + $0x10] sm:$0xff]  }
 0x9c1   :  { %1058 = vmatprep.subr.bf16.mxu0 %v1418_v1  ;;  %v1316_v1 = vld [vmem:[%s2048_s6 + $0x18] sm:$0xff]  }
 0x9c4   :  { %1059 = vmatpush1.bf16.msra.mxu0 %v1419_v41 }
 0x9c5   :  { %1268 = vmatprep.subr.bf16.mxu0 %v1422_v21 }
 0xa8a   :  { %v886_v60 = vpop.f32.mrb[12].mxu0 }
 0xa8b   :  { %v887_v25 = vadd.f32 %v886_v60, %v1823_v54  ;;  %v888_v52 = vpop.f32.mrb[13].mxu0 }
 0xa8c   :  { %v889_v61 = vadd.f32 %v888_v52, %v1832_v63  ;;  %v890_v29 = vpop.f32.mrb[14].mxu0 }
 0xa8d   :  { %v1239_v53 = vmul.f32 -1.442695, %v887_v25  ;;  %v891_v0 = vpop.f32.mrb[15].mxu0 }
 0xa8e   :  { %v1240_v42 = vmul.f32 -1.442695, %v889_v61 }
 0xa8f   :  { %1377 = vpow2.f32 %v1239_v53 }
 0xa90   :  { %1379 = vtanh.f32 %v889_v61 }
 0xa99   :  { %v1378_v55 = vpop.eup %1377 }
 0xa9a   :  { %v896_v47 = vadd.f32 1.0, %v1378_v55  ;;  %v1380_v62 = vpop.eup %1379 }
 0xa9c   :  { %1381 = vrcp.f32 %v896_v47 }
 0xa9d   :  { %1383 = vpow2.f32 %v1240_v42 }
 0xaa6   :  { %v1382_v36 = vpop.eup %1381 }
 0xaa7   :  { %v907_v22 = vmul.f32 %v1382_v36, %v1380_v62  ;;  %v1384_v39 = vpop.eup %1383  ;;  %v906_v3 = vmul.f32 %v1382_v36, %v812_v45 }
 0xaa8   :  { %v903_v54 = vadd.f32 1.0, %v1384_v39 }
 0xaa9   :  { %909 = vrot.lane.b32.xlu0 %v907_v22, %s1421_s4 }
 0xaaa   :  { %1385 = vrcp.f32 %v903_v54 }
 0xab4   :  { %v1386_v5 = vpop.eup %1385 }
 0xb1b   :  { %v910_v50 = vpop.permute.xlu0 %909 }
 0xb1c   :  { %v912_v63 = vadd.f32 %v910_v50, %v906_v3 }
 0xb1e   :  { %1387 = vtanh.f32 %v912_v63 }
 0xb28   :  { %v1388_v17 = vpop.eup %1387 }
 0xb29   :  { %v914_v37 = vmul.f32 %v1388_v17, %v1386_v5 }
 0xb2b   :  { %v915_v32 = vpack.c.bf16 %v914_v37, %v914_v37 }
 0xb2d   :  { %917 = vrot.lane.b32.xlu1 %v915_v32, %s1421_s4 }
 0xb9f   :  { %v918_v6 = vpop.permute.xlu1 %917 }
 0xba0   :  { %1241 = vmatmul.mubr.msk.bf16.vlgmr.msra.gmra.mrb[28].mxu1 %vm348_vm9, %v918_v6 }
 0xc73   :  { %v986_v59 = vpop.f32.mrb[28].mxu1 }
 0xc74   :  { %v987_v24 = vadd.f32 %v986_v59, %v1859_v56  ;;  %v988_v11 = vpop.f32.mrb[29].mxu1 }
 0xc75   :  { %v989_v27 = vadd.f32 %v988_v11, %v1874_v2  ;;  %v990_v34 = vpop.f32.mrb[30].mxu1 }
 0xc76   :  { %v1242_v23 = vmul.f32 -1.442695, %v987_v24  ;;  %v991_v16 = vpop.f32.mrb[31].mxu1 }
 0xc77   :  { %v1243_v44 = vmul.f32 -1.442695, %v989_v27 }
 0xc78   :  { %1389 = vpow2.f32 %v1242_v23 }
 0xc79   :  { %1391 = vtanh.f32 %v989_v27 }
 0xc82   :  { %v1390_v20 = vpop.eup %1389 }
 0xc83   :  { %v996_v57 = vadd.f32 1.0, %v1390_v20  ;;  %v1392_v7 = vpop.eup %1391 }
 0xc85   :  { %1393 = vrcp.f32 %v996_v57 }
 0xc86   :  { %1395 = vpow2.f32 %v1243_v44 }
 0xc8f   :  { %v1394_v4 = vpop.eup %1393 }
 0xc90   :  { %v1007_v19 = vmul.f32 %v1394_v4, %v1392_v7  ;;  %v1396_v8 = vpop.eup %1395  ;;  %v1006_v9 = vmul.f32 %v1394_v4, %v912_v63 }
 0xc91   :  { %v1003_v56 = vadd.f32 1.0, %v1396_v8 }
 0xc92   :  { %1009 = vrot.lane.b32.xlu0 %v1007_v19, %s1421_s4 }
 0xc93   :  { %1397 = vrcp.f32 %v1003_v56 }
 0xc9d   :  { %v1398_v12 = vpop.eup %1397 }
 0xd04   :  { %v1010_v10 = vpop.permute.xlu0 %1009 }
 0xd05   :  { %v1012_v2 = vadd.f32 %v1010_v10, %v1006_v9 }
 0xd07   :  { %1399 = vtanh.f32 %v1012_v2 }
 0xd11   :  { %v1400_v58 = vpop.eup %1399 }
 0xd12   :  { %v1014_v13 = vmul.f32 %v1400_v58, %v1398_v12 }
 0xd14   :  { %v1015_v14 = vpack.c.bf16 %v1014_v13, %v1014_v13 }
 0xd16   :  { %1017 = vrot.lane.b32.xlu1 %v1015_v14, %s1421_s4 }
 0xd88   :  { %v1018_v35 = vpop.permute.xlu1 %1017 }
 0xd89   :  { %1244 = vmatmul.mubr.msk.bf16.vlgmr.msra.gmra.mrb[16].mxu0 %vm348_vm9, %v1018_v35 }
 0xd8a   :  { %1276 = vmatprep.mubr.msk.bf16.mxu0 %vm1423_vm8, %v1422_v21 }
 0xe5c   :  { %v1086_v51 = vpop.f32.mrb[16].mxu0 }
 0xe5d   :  { %v1087_v43 = vadd.f32 %v1086_v51, %v1887_v15  ;;  %v1088_v45 = vpop.f32.mrb[17].mxu0  ;;  %v1313_v15 = vld [vmem:[%s2048_s6] sm:$0xff]  }
 0xe5e   :  { %v1089_v48 = vadd.f32 %v1088_v45, %v1903_v38  ;;  %v1090_v49 = vpop.f32.mrb[18].mxu0  ;;  %1269 = vmatpush3.bf16.msra.mxu0 %v1313_v15  ;;  %v1314_v38 = vld [vmem:[%s2048_s6 + $0x8] sm:$0xff]  }
 0xe5f   :  { %v1245_v26 = vmul.f32 -1.442695, %v1087_v43  ;;  %v1091_v28 = vpop.f32.mrb[19].mxu0  ;;  %1270 = vmatprep.subr.bf16.mxu0 %v1422_v21 }
 0xe60   :  { %v1246_v41 = vmul.f32 -1.442695, %v1089_v48 }
 0xe61   :  { %1401 = vpow2.f32 %v1245_v26 }
 0xe62   :  { %1403 = vtanh.f32 %v1089_v48  ;;  %1271 = vmatpush3.bf16.msra.mxu0 %v1314_v38 }
 0xe63   :  { %1272 = vmatprep.subr.bf16.mxu0 %v1422_v21 }
 0xe66   :  { %1273 = vmatpush3.bf16.msra.mxu0 %v1315_v46 }
 0xe67   :  { %1274 = vmatprep.subr.bf16.mxu0 %v1422_v21  ;;  %v1200_v21 = vld [vmem:[%s2049_s7] ss:$0 sm:$0xff] }
 0xe6a   :  { %1275 = vmatpush3.bf16.msra.mxu0 %v1316_v1 }
 0xe6b   :  { %v1402_v18 = vpop.eup %1401 }
 0xe6c   :  { %v1096_v30 = vadd.f32 1.0, %v1402_v18  ;;  %v1404_v33 = vpop.eup %1403 }
 0xe6e   :  { %1405 = vrcp.f32 %v1096_v30 }
 0xe6f   :  { %1407 = vpow2.f32 %v1246_v41 }
 0xe78   :  { %v1406_v31 = vpop.eup %1405 }
 0xe79   :  { %v1107_v40 = vmul.f32 %v1406_v31, %v1404_v33  ;;  %v1408_v60 = vpop.eup %1407  ;;  %v1106_v52 = vmul.f32 %v1406_v31, %v1012_v2 }
 0xe7a   :  { %v1103_v25 = vadd.f32 1.0, %v1408_v60 }
 0xe7b   :  { %1109 = vrot.lane.b32.xlu0 %v1107_v40, %s1421_s4 }
 0xe7c   :  { %1409 = vrcp.f32 %v1103_v25 }
 0xe86   :  { %v1410_v53 = vpop.eup %1409 }
 0xeed   :  { %v1110_v61 = vpop.permute.xlu0 %1109 }
 0xeee   :  { %v1112_v29 = vadd.f32 %v1110_v61, %v1106_v52 }
 0xef0   :  { %1411 = vtanh.f32 %v1112_v29 }
 0xefa   :  { %v1412_v0 = vpop.eup %1411 }
 0xefb   :  { %v1114_v55 = vmul.f32 %v1412_v0, %v1410_v53 }
 0xefd   :  { %v1115_v47 = vpack.c.bf16 %v1114_v55, %v1114_v55 }
 0xeff   :  { %1125 = vrot.lane.b32.xlu1 %v1115_v47, %s1421_s4 }
 0xf71   :  { %v1126_v62 = vpop.permute.xlu1 %1125 }
 0xf72   :  { %1277 = vmatmul.mubr.msk.bf16.vlgmr.msra.gmra.mrb[0].mxu0 %vm348_vm9, %v1126_v62 }
0x1045   :  { %v1188_v36 = vpop.f32.mrb[0].mxu0 }
0x1046   :  { %v1280_v22 = vadd.f32 %v1200_v21, %v1188_v36  ;;  %v1278_v42 = vpop.f32.mrb[1].mxu0 }
0x1047   :  { %v1191_v39 = vpop.f32.mrb[2].mxu0 }
0x1048   :  { %1195 = vst [vmem:[%s2050_s8] sm:$0xff] %v1280_v22  ;;  %v1279_v54 = vpop.f32.mrb[3].mxu0 }

</bundles_post_ra>
